<compile_context>
chip_gen: v6e
topology: v6e:2x2x1
jax: 0.10.0
libtpu: 0.0.40
codegen_flags: <defaults>
</compile_context>

<pallas_src>
import functools
import math

import jax
import jax.numpy as jnp
from jax.experimental import pallas as pl
from jax.experimental.pallas import tpu as pltpu


# ------------------------------ in-kernel helpers --------------------------- #

def _layernorm(x, gamma, beta, eps):
    mu = jnp.mean(x, axis=-1, keepdims=True)
    xc = x - mu
    var = jnp.mean(xc * xc, axis=-1, keepdims=True)
    return xc * jax.lax.rsqrt(var + eps) * gamma + beta


# ------------------------------- fused kernel ------------------------------- #

def _fused_bert_kernel(x_emb_hbm, bias_ref, emb_ln_ref,
                       qkv_w_ref, o_w_ref, i_w_ref, f_w_ref, small_ref,
                       pool_w_ref, pool_b_ref, cls_w_ref, cls_b_ref,
                       logits_ref, x_vmem, *, B, S, H, I, nh, eps):
    l = pl.program_id(0)
    hd = H // nh
    scale = 1.0 / math.sqrt(hd)

    # -- step 0: copy embeddings HBM -> resident VMEM once, LayerNorm in place --
    @pl.when(l == 0)
    def _():
        pltpu.sync_copy(x_emb_hbm, x_vmem)
        emb_ln = emb_ln_ref[...]
        x_vmem[...] = _layernorm(x_vmem[...], emb_ln[0:1, :], emb_ln[1:2, :], eps)

    x = x_vmem[...]                                   # (B*S, H), f32

    # -- unpack the packed per-layer small-parameter block (one DMA) -----------
    qkv_b = small_ref[0:1, :3 * H]
    o_b = small_ref[1:2, :H]
    i_b = small_ref[2:3, :I]
    f_b = small_ref[3:4, :H]
    ln1_g = small_ref[4:5, :H]
    ln1_b = small_ref[5:6, :H]
    ln2_g = small_ref[6:7, :H]
    ln2_b = small_ref[7:8, :H]

    # -- fused QKV projection: one MXU pass -------------------------------------
    qkv = jnp.dot(x, qkv_w_ref[...], preferred_element_type=jnp.float32) + qkv_b

    q_all = qkv[:, :H].reshape(B, S, H)
    k_all = qkv[:, H:2 * H].reshape(B, S, H)
    v_all = qkv[:, 2 * H:].reshape(B, S, H)
    bias3 = bias_ref[...].reshape(B, 1, S)            # additive key mask, bcast over q

    # -- multi-head self-attention: batched einsums over batch, tiny head loop --
    head_ctx = []
    for h in range(nh):
        c0 = h * hd
        q = q_all[:, :, c0:c0 + hd]                   # (B, S, hd)
        k = k_all[:, :, c0:c0 + hd]
        v = v_all[:, :, c0:c0 + hd]
        s = jnp.einsum('bqd,bkd->bqk', q, k,
                       preferred_element_type=jnp.float32) * scale + bias3
        m = jnp.max(s, axis=-1, keepdims=True)
        p = jnp.exp(s - m)
        denom = jnp.sum(p, axis=-1, keepdims=True)
        p = p * pl.reciprocal(denom, approx=True)     # EUP slot (tiny rel. error)
        head_ctx.append(jnp.einsum('bqk,bkd->bqd', p, v,
                                   preferred_element_type=jnp.float32))
    ctx = jnp.concatenate(head_ctx, axis=-1).reshape(B * S, H)

    # -- output projection + residual + LayerNorm (fused) -----------------------
    attn_out = jnp.dot(ctx, o_w_ref[...], preferred_element_type=jnp.float32) + o_b
    x = _layernorm(x + attn_out, ln1_g, ln1_b, eps)

    # -- FFN + residual + LayerNorm (fused) --------------------------------------
    inter = jnp.dot(x, i_w_ref[...], preferred_element_type=jnp.float32) + i_b
    # TODO(synk): PyTorch/HF BERT uses the exact erf GELU; the tanh approximation
    # is kept here (~1e-3 difference) since weights are synthetic anyway.
    inter = jax.nn.gelu(inter, approximate=True)
    ffn = jnp.dot(inter, f_w_ref[...], preferred_element_type=jnp.float32) + f_b
    x = _layernorm(x + ffn, ln2_g, ln2_b, eps)
    x_vmem[...] = x

    # -- last step: pooler + dropout(eval identity) + classifier head -----------
    @pl.when(l == pl.num_programs(0) - 1)
    def _():
        # CLS rows (token 0 of every sequence) via one strided sublane load.
        cls = x_vmem[pl.ds(0, B, stride=S), :]        # (B, H)
        pooled = jnp.tanh(jnp.dot(cls, pool_w_ref[...],
                                  preferred_element_type=jnp.float32)
                          + pool_b_ref[...])
        # dropout(p=0.25) is an identity in eval mode (matches model.eval()).
        logits_ref[...] = (jnp.dot(pooled, cls_w_ref[...],
                                   preferred_element_type=jnp.float32)
                           + cls_b_ref[...]).astype(logits_ref.dtype)


# ------------------------- parameters (deterministic) ----------------------- #

CFG = dict(
    vocab=50, max_pos=16, type_vocab=2,
    hidden=32, heads=2, layers=2, intermediate=64,
    n_classes=3,
)


def init_params(key, cfg):
    H, I = cfg["hidden"], cfg["intermediate"]

    def nrm(k, shape):
        return jax.random.normal(k, shape, dtype=jnp.float32) * 0.02

    keys = iter(jax.random.split(key, 64))
    p = {
        "word_emb": nrm(next(keys), (cfg["vocab"], H)),
        "pos_emb": nrm(next(keys), (cfg["max_pos"], H)),
        "type_emb": nrm(next(keys), (cfg["type_vocab"], H)),
        "emb_ln_g": jnp.ones((H,), jnp.float32),
        "emb_ln_b": jnp.zeros((H,), jnp.float32),
        "pool_w": nrm(next(keys), (H, H)),
        "pool_b": jnp.zeros((H,), jnp.float32),
        "cls_w": nrm(next(keys), (H, cfg["n_classes"])),
        "cls_b": jnp.zeros((cfg["n_classes"],), jnp.float32),
        "layers": [],
    }
    for _ in range(cfg["layers"]):
        lyr = {
            "q_w": nrm(next(keys), (H, H)), "q_b": jnp.zeros((H,), jnp.float32),
            "k_w": nrm(next(keys), (H, H)), "k_b": jnp.zeros((H,), jnp.float32),
            "v_w": nrm(next(keys), (H, H)), "v_b": jnp.zeros((H,), jnp.float32),
            "o_w": nrm(next(keys), (H, H)), "o_b": jnp.zeros((H,), jnp.float32),
            "ln1_g": jnp.ones((H,), jnp.float32), "ln1_b": jnp.zeros((H,), jnp.float32),
            "i_w": nrm(next(keys), (H, I)), "i_b": jnp.zeros((I,), jnp.float32),
            "f_w": nrm(next(keys), (I, H)), "f_b": jnp.zeros((H,), jnp.float32),
            "ln2_g": jnp.ones((H,), jnp.float32), "ln2_b": jnp.zeros((H,), jnp.float32),
        }
        p["layers"].append(lyr)
    return p


# --------------------------------- forward ---------------------------------- #

def sentiment_classifier_forward(params, input_ids, attention_mask, cfg):
    B, S = input_ids.shape
    H, I = cfg["hidden"], cfg["intermediate"]
    nh, L = cfg["heads"], cfg["layers"]
    n_classes = cfg["n_classes"]
    hd = H // nh
    BS = B * S
    NPAD = 128                 # lane-dense padded class dim for the single HBM store
    W = max(3 * H, I)          # lane width of the packed per-layer small-param block

    # --- embedding gather glue in plain JAX (no clean Pallas gather here) -----
    word = jnp.take(params["word_emb"], input_ids, axis=0)           # (B, S, H)
    pos = params["pos_emb"][:S][None, :, :]                          # (1, S, H)
    tok = params["type_emb"][0][None, None, :]                       # token_type_ids = 0
    x_emb = (word + pos + tok).reshape(BS, H).astype(jnp.float32)

    # additive attention mask: 0 keep, -1e9 masked (f32 end-to-end)
    bias = (1.0 - attention_mask.astype(jnp.float32)) * -1e9         # (B, S)

    emb_ln = jnp.stack([params["emb_ln_g"], params["emb_ln_b"]])     # (2, H)

    # --- stack per-layer weights along a leading layer axis; fuse Q/K/V -------
    def stack(fn):
        return jnp.stack([fn(l) for l in params["layers"]])

    qkv_w = stack(lambda l: jnp.concatenate([l["q_w"], l["k_w"], l["v_w"]], axis=1))  # (L,H,3H)
    o_w = stack(lambda l: l["o_w"])                                  # (L, H, H)
    i_w = stack(lambda l: l["i_w"])                                  # (L, H, I)
    f_w = stack(lambda l: l["f_w"])                                  # (L, I, H)
    # NOTE(scaling): at real BERT dims cast these four weight stacks to bf16
    # (keep preferred_element_type=f32) and K-tile the FFN matmuls.

    def pad_row(v):
        return jnp.zeros((W,), jnp.float32).at[:v.shape[0]].set(v)

    # all tiny per-layer vectors packed into ONE (L, 8, W) block, rows:
    #   0: qkv_b   1: o_b   2: i_b   3: f_b
    #   4: ln1_g   5: ln1_b 6: ln2_g 7: ln2_b
    small = stack(lambda l: jnp.stack([
        pad_row(jnp.concatenate([l["q_b"], l["k_b"], l["v_b"]])),
        pad_row(l["o_b"]), pad_row(l["i_b"]), pad_row(l["f_b"]),
        pad_row(l["ln1_g"]), pad_row(l["ln1_b"]),
        pad_row(l["ln2_g"]), pad_row(l["ln2_b"]),
    ]))                                                              # (L, 8, W)

    pool_w = params["pool_w"]                                        # (H, H)
    pool_b = params["pool_b"][None]                                  # (1, H)
    cls_w_pad = jnp.zeros((H, NPAD), jnp.float32).at[:, :n_classes].set(params["cls_w"])
    cls_b_pad = jnp.zeros((1, NPAD), jnp.float32).at[:, :n_classes].set(params["cls_b"][None])

    kernel = functools.partial(_fused_bert_kernel,
                               B=B, S=S, H=H, I=I, nh=nh, eps=1e-12)

    def full(shape):
        return pl.BlockSpec(shape, lambda l: (0,) * len(shape))

    def per_layer(shape):
        return pl.BlockSpec((None,) + shape, lambda l: (l,) + (0,) * len(shape))

    # advisory cost hint for the fused kernel
    flops = L * (2 * BS * H * 3 * H + B * nh * 4 * S * S * hd
                 + 2 * BS * H * H + 4 * BS * H * I)
    flops += 2 * B * H * H + 2 * B * H * NPAD
    transcendentals = L * (B * nh * S * S + BS * I) + B * H
    bytes_accessed = 4 * (x_emb.size + bias.size + emb_ln.size + qkv_w.size
                          + o_w.size + i_w.size + f_w.size + small.size
                          + pool_w.size + pool_b.size + cls_w_pad.size
                          + cls_b_pad.size + B * NPAD)

    # NOTE(scaling, v7x): add a leading "parallel" batch-row grid axis here
    # (grid=(row_blocks, L), dimension_semantics=("parallel", "arbitrary")) so the
    # second TensorCore is used; attention never crosses batch elements.
    logits_pad = pl.pallas_call(
        kernel,
        out_shape=jax.ShapeDtypeStruct((B, NPAD), jnp.float32),
        grid=(L,),
        in_specs=[
            pl.BlockSpec(memory_space=pl.ANY),  # x_emb stays in HBM, copied at l==0
            full((B, S)),             # additive mask bias
            full((2, H)),             # emb LN gamma/beta
            per_layer((H, 3 * H)),    # qkv_w
            per_layer((H, H)),        # o_w
            per_layer((H, I)),        # i_w
            per_layer((I, H)),        # f_w
            per_layer((8, W)),        # packed small per-layer params (one DMA)
            full((H, H)),             # pool_w
            full((1, H)),             # pool_b
            full((H, NPAD)),          # cls_w (lane-padded)
            full((1, NPAD)),          # cls_b (lane-padded)
        ],
        out_specs=full((B, NPAD)),
        scratch_shapes=[pltpu.VMEM((BS, H), jnp.float32)],
        compiler_params=pltpu.CompilerParams(
            dimension_semantics=("arbitrary",),
            vmem_limit_bytes=64 * 1024 * 1024),
        cost_estimate=pl.CostEstimate(flops=flops,
                                      transcendentals=transcendentals,
                                      bytes_accessed=bytes_accessed),
    )(x_emb, bias, emb_ln, qkv_w, o_w, i_w, f_w, small,
      pool_w, pool_b, cls_w_pad, cls_b_pad)

    return logits_pad[:, :n_classes]                                 # (B, n_classes)


# ----------------------------------- main ----------------------------------- #

if __name__ == "__main__":
    key = jax.random.PRNGKey(0)
    k_params, k_ids = jax.random.split(key)

    B, S = 2, 8
    params = init_params(k_params, CFG)
    input_ids = jax.random.randint(k_ids, (B, S), 0, CFG["vocab"], dtype=jnp.int32)
    attention_mask = jnp.array(
        [[1, 1, 1, 1, 1, 1, 1, 1],
         [1, 1, 1, 1, 1, 0, 0, 0]], dtype=jnp.int32)

    logits = sentiment_classifier_forward(params, input_ids, attention_mask, CFG)
    logits = jax.block_until_ready(logits)
    assert logits.shape == (B, CFG["n_classes"]) and logits.dtype == jnp.float32
    assert bool(jnp.all(jnp.isfinite(logits)))
    print("KERNEL_OK")
</pallas_src>

<mosaic_0001>
module attributes {stable_mosaic.version = 11 : i64} {
  func.func @_fused_bert_kernel(%arg0: i32, %arg1: memref<16x32xf32, #tpu.memory_space<any>>, %arg2: memref<2x8xf32, #tpu.memory_space<vmem>>, %arg3: memref<2x32xf32, #tpu.memory_space<vmem>>, %arg4: memref<1x32x96xf32, #tpu.memory_space<vmem>>, %arg5: memref<1x32x32xf32, #tpu.memory_space<vmem>>, %arg6: memref<1x32x64xf32, #tpu.memory_space<vmem>>, %arg7: memref<1x64x32xf32, #tpu.memory_space<vmem>>, %arg8: memref<1x8x96xf32, #tpu.memory_space<vmem>>, %arg9: memref<32x32xf32, #tpu.memory_space<vmem>>, %arg10: memref<1x32xf32, #tpu.memory_space<vmem>>, %arg11: memref<32x128xf32, #tpu.memory_space<vmem>>, %arg12: memref<1x128xf32, #tpu.memory_space<vmem>>, %arg13: memref<2x128xf32, #tpu.memory_space<vmem>>, %arg14: memref<16x32xf32, #tpu.memory_space<vmem>>) attributes {dimension_semantics = [#tpu.dimension_semantics<arbitrary>], iteration_bounds = array<i64: 2>, scalar_prefetch = 0 : i64, scratch_operands = 1 : i64, tpu.core_type = #tpu.core_type<tc>, window_params = [{}, {pipeline_mode = #tpu.pipeline_mode<synchronous>, transform_indices = @transform_1, window_bounds = array<i64: 2, 8>}, {pipeline_mode = #tpu.pipeline_mode<synchronous>, transform_indices = @transform_2, window_bounds = array<i64: 2, 32>}, {transform_indices = @transform_3, window_bounds = array<i64: 1, 32, 96>}, {transform_indices = @transform_4, window_bounds = array<i64: 1, 32, 32>}, {transform_indices = @transform_5, window_bounds = array<i64: 1, 32, 64>}, {transform_indices = @transform_6, window_bounds = array<i64: 1, 64, 32>}, {transform_indices = @transform_7, window_bounds = array<i64: 1, 8, 96>}, {pipeline_mode = #tpu.pipeline_mode<synchronous>, transform_indices = @transform_8, window_bounds = array<i64: 32, 32>}, {pipeline_mode = #tpu.pipeline_mode<synchronous>, transform_indices = @transform_9, window_bounds = array<i64: 1, 32>}, {pipeline_mode = #tpu.pipeline_mode<synchronous>, transform_indices = @transform_10, window_bounds = array<i64: 32, 128>}, {pipeline_mode = #tpu.pipeline_mode<synchronous>, transform_indices = @transform_11, window_bounds = array<i64: 1, 128>}, {pipeline_mode = #tpu.pipeline_mode<synchronous>, transform_indices = @transform_12, window_bounds = array<i64: 2, 128>}]} {
    %c0_i32 = arith.constant 0 : i32
    %0 = arith.cmpi eq, %arg0, %c0_i32 : i32
    %1 = arith.extui %0 : i1 to i32
    %c0_i32_0 = arith.constant 0 : i32
    %2 = arith.cmpi ne, %1, %c0_i32_0 : i32
    scf.if %2 {
      "tpu.region"() ({
        %172 = tpu.sem_alloc : memref<!tpu.dma_semaphore, #tpu.memory_space<semaphore_mem>>
        tpu.enqueue_dma source(%arg1 : memref<16x32xf32, #tpu.memory_space<any>>) target(%arg14 : memref<16x32xf32, #tpu.memory_space<vmem>>) target_semaphore(%172 : memref<!tpu.dma_semaphore, #tpu.memory_space<semaphore_mem>>)
        tpu.wait_dma2 semaphore(%172 : memref<!tpu.dma_semaphore, #tpu.memory_space<semaphore_mem>>) src(%arg1 : memref<16x32xf32, #tpu.memory_space<any>>) dst(%arg14 : memref<16x32xf32, #tpu.memory_space<vmem>>)
        tpu.yield
      }) : () -> ()
      %c0_63 = arith.constant 0 : index
      %c0_64 = arith.constant 0 : index
      %147 = vector.load %arg3[%c0_63, %c0_64] : memref<2x32xf32, #tpu.memory_space<vmem>>, vector<2x32xf32>
      %c0_65 = arith.constant 0 : index
      %c0_66 = arith.constant 0 : index
      %148 = vector.load %arg14[%c0_65, %c0_66] : memref<16x32xf32, #tpu.memory_space<vmem>>, vector<16x32xf32>
      %149 = vector.extract_strided_slice %147 {offsets = [0, 0], sizes = [1, 32], strides = [1, 1]} : vector<2x32xf32> to vector<1x32xf32>
      %150 = vector.extract_strided_slice %147 {offsets = [1, 0], sizes = [1, 32], strides = [1, 1]} : vector<2x32xf32> to vector<1x32xf32>
      %cst_67 = arith.constant dense<0.000000e+00> : vector<16xf32>
      %151 = vector.multi_reduction <add>, %148, %cst_67 [1] : vector<16x32xf32> to vector<16xf32>
      %152 = vector.shape_cast %151 : vector<16xf32> to vector<16x1xf32>
      %cst_68 = arith.constant 3.200000e+01 : f32
      %153 = vector.broadcast %cst_68 : f32 to vector<16x1xf32>
      %154 = arith.divf %152, %153 : vector<16x1xf32>
      %155 = vector.broadcast %154 : vector<16x1xf32> to vector<16x32xf32>
      %156 = arith.subf %148, %155 : vector<16x32xf32>
      %157 = arith.mulf %156, %156 : vector<16x32xf32>
      %cst_69 = arith.constant dense<0.000000e+00> : vector<16xf32>
      %158 = vector.multi_reduction <add>, %157, %cst_69 [1] : vector<16x32xf32> to vector<16xf32>
      %159 = vector.shape_cast %158 : vector<16xf32> to vector<16x1xf32>
      %cst_70 = arith.constant 3.200000e+01 : f32
      %160 = vector.broadcast %cst_70 : f32 to vector<16x1xf32>
      %161 = arith.divf %159, %160 : vector<16x1xf32>
      %cst_71 = arith.constant 9.99999996E-13 : f32
      %162 = vector.broadcast %cst_71 : f32 to vector<16x1xf32>
      %163 = arith.addf %161, %162 : vector<16x1xf32>
      %164 = math.rsqrt %163 : vector<16x1xf32>
      %165 = vector.broadcast %164 : vector<16x1xf32> to vector<16x32xf32>
      %166 = arith.mulf %156, %165 : vector<16x32xf32>
      %167 = vector.broadcast %149 : vector<1x32xf32> to vector<16x32xf32>
      %168 = arith.mulf %166, %167 : vector<16x32xf32>
      %169 = vector.broadcast %150 : vector<1x32xf32> to vector<16x32xf32>
      %170 = arith.addf %168, %169 : vector<16x32xf32>
      %c0_72 = arith.constant 0 : index
      %c0_73 = arith.constant 0 : index
      %171 = vector.load %arg14[%c0_72, %c0_73] : memref<16x32xf32, #tpu.memory_space<vmem>>, vector<16x32xf32>
      tpu.vector_store %arg14[%c0_72, %c0_73], %170 {strides = array<i32>} : memref<16x32xf32, #tpu.memory_space<vmem>>, vector<16x32xf32>,
    } else {
    }
    %c0 = arith.constant 0 : index
    %c0_1 = arith.constant 0 : index
    %3 = vector.load %arg14[%c0, %c0_1] : memref<16x32xf32, #tpu.memory_space<vmem>>, vector<16x32xf32>
    %c0_2 = arith.constant 0 : index
    %c0_3 = arith.constant 0 : index
    %c0_4 = arith.constant 0 : index
    %4 = vector.load %arg8[%c0_2, %c0_3, %c0_4] : memref<1x8x96xf32, #tpu.memory_space<vmem>>, vector<1x1x96xf32>
    %5 = vector.shape_cast %4 : vector<1x1x96xf32> to vector<1x96xf32>
    %c0_5 = arith.constant 0 : index
    %c1 = arith.constant 1 : index
    %c0_6 = arith.constant 0 : index
    %6 = vector.load %arg8[%c0_5, %c1, %c0_6] : memref<1x8x96xf32, #tpu.memory_space<vmem>>, vector<1x1x32xf32>
    %7 = vector.shape_cast %6 : vector<1x1x32xf32> to vector<1x32xf32>
    %c0_7 = arith.constant 0 : index
    %c2 = arith.constant 2 : index
    %c0_8 = arith.constant 0 : index
    %8 = vector.load %arg8[%c0_7, %c2, %c0_8] : memref<1x8x96xf32, #tpu.memory_space<vmem>>, vector<1x1x64xf32>
    %9 = vector.shape_cast %8 : vector<1x1x64xf32> to vector<1x64xf32>
    %c0_9 = arith.constant 0 : index
    %c3 = arith.constant 3 : index
    %c0_10 = arith.constant 0 : index
    %10 = vector.load %arg8[%c0_9, %c3, %c0_10] : memref<1x8x96xf32, #tpu.memory_space<vmem>>, vector<1x1x32xf32>
    %11 = vector.shape_cast %10 : vector<1x1x32xf32> to vector<1x32xf32>
    %c0_11 = arith.constant 0 : index
    %c4 = arith.constant 4 : index
    %c0_12 = arith.constant 0 : index
    %12 = vector.load %arg8[%c0_11, %c4, %c0_12] : memref<1x8x96xf32, #tpu.memory_space<vmem>>, vector<1x1x32xf32>
    %13 = vector.shape_cast %12 : vector<1x1x32xf32> to vector<1x32xf32>
    %c0_13 = arith.constant 0 : index
    %c5 = arith.constant 5 : index
    %c0_14 = arith.constant 0 : index
    %14 = vector.load %arg8[%c0_13, %c5, %c0_14] : memref<1x8x96xf32, #tpu.memory_space<vmem>>, vector<1x1x32xf32>
    %15 = vector.shape_cast %14 : vector<1x1x32xf32> to vector<1x32xf32>
    %c0_15 = arith.constant 0 : index
    %c6 = arith.constant 6 : index
    %c0_16 = arith.constant 0 : index
    %16 = vector.load %arg8[%c0_15, %c6, %c0_16] : memref<1x8x96xf32, #tpu.memory_space<vmem>>, vector<1x1x32xf32>
    %17 = vector.shape_cast %16 : vector<1x1x32xf32> to vector<1x32xf32>
    %c0_17 = arith.constant 0 : index
    %c7 = arith.constant 7 : index
    %c0_18 = arith.constant 0 : index
    %18 = vector.load %arg8[%c0_17, %c7, %c0_18] : memref<1x8x96xf32, #tpu.memory_space<vmem>>, vector<1x1x32xf32>
    %19 = vector.shape_cast %18 : vector<1x1x32xf32> to vector<1x32xf32>
    %c0_19 = arith.constant 0 : index
    %c0_20 = arith.constant 0 : index
    %c0_21 = arith.constant 0 : index
    %20 = vector.load %arg4[%c0_19, %c0_20, %c0_21] : memref<1x32x96xf32, #tpu.memory_space<vmem>>, vector<1x32x96xf32>
    %21 = vector.shape_cast %20 : vector<1x32x96xf32> to vector<32x96xf32>
    %cst = arith.constant dense<0.000000e+00> : vector<16x96xf32>
    %22 = tpu.matmul %3, %21, %cst {dimension_numbers = #tpu.dot_dimension_numbers<[1], [0], [0], [1], [0, 0, 1, 1], [], []>} : vector<16x32xf32>, vector<32x96xf32>, vector<16x96xf32> -> vector<16x96xf32>
    %23 = vector.broadcast %5 : vector<1x96xf32> to vector<16x96xf32>
    %24 = arith.addf %22, %23 : vector<16x96xf32>
    %25 = vector.extract_strided_slice %24 {offsets = [0, 0], sizes = [16, 32], strides = [1, 1]} : vector<16x96xf32> to vector<16x32xf32>
    %26 = vector.shape_cast %25 : vector<16x32xf32> to vector<2x8x32xf32>
    %27 = vector.extract_strided_slice %24 {offsets = [0, 32], sizes = [16, 32], strides = [1, 1]} : vector<16x96xf32> to vector<16x32xf32>
    %28 = vector.shape_cast %27 : vector<16x32xf32> to vector<2x8x32xf32>
    %29 = vector.extract_strided_slice %24 {offsets = [0, 64], sizes = [16, 32], strides = [1, 1]} : vector<16x96xf32> to vector<16x32xf32>
    %30 = vector.shape_cast %29 : vector<16x32xf32> to vector<2x8x32xf32>
    %c0_22 = arith.constant 0 : index
    %c0_23 = arith.constant 0 : index
    %31 = vector.load %arg2[%c0_22, %c0_23] : memref<2x8xf32, #tpu.memory_space<vmem>>, vector<2x8xf32>
    %32 = vector.shape_cast %31 : vector<2x8xf32> to vector<2x1x8xf32>
    %33 = vector.extract_strided_slice %26 {offsets = [0, 0, 0], sizes = [2, 8, 16], strides = [1, 1, 1]} : vector<2x8x32xf32> to vector<2x8x16xf32>
    %34 = vector.extract_strided_slice %28 {offsets = [0, 0, 0], sizes = [2, 8, 16], strides = [1, 1, 1]} : vector<2x8x32xf32> to vector<2x8x16xf32>
    %35 = vector.extract_strided_slice %30 {offsets = [0, 0, 0], sizes = [2, 8, 16], strides = [1, 1, 1]} : vector<2x8x32xf32> to vector<2x8x16xf32>
    "tpu.trace_start"() <{level = 10 : i32, message = "bqd,bkd->bqk"}> : () -> ()
    %cst_24 = arith.constant dense<0.000000e+00> : vector<2x8x8xf32>
    %36 = tpu.matmul %33, %34, %cst_24 {dimension_numbers = #tpu.dot_dimension_numbers<[2], [2], [1], [1], [0, 0, 0, 1, 1, 1], [0], [0]>} : vector<2x8x16xf32>, vector<2x8x16xf32>, vector<2x8x8xf32> -> vector<2x8x8xf32>
    "tpu.trace_stop"() : () -> ()
    %cst_25 = arith.constant 2.500000e-01 : f32
    %37 = vector.broadcast %cst_25 : f32 to vector<2x8x8xf32>
    %38 = arith.mulf %36, %37 : vector<2x8x8xf32>
    %39 = vector.broadcast %32 : vector<2x1x8xf32> to vector<2x8x8xf32>
    %40 = arith.addf %38, %39 : vector<2x8x8xf32>
    %cst_26 = arith.constant dense<0xFF800000> : vector<2x8xf32>
    %41 = vector.multi_reduction <maximumf>, %40, %cst_26 [2] : vector<2x8x8xf32> to vector<2x8xf32>
    %42 = vector.shape_cast %41 : vector<2x8xf32> to vector<2x8x1xf32>
    %43 = vector.broadcast %42 : vector<2x8x1xf32> to vector<2x8x8xf32>
    %44 = arith.subf %40, %43 : vector<2x8x8xf32>
    %45 = math.exp %44 : vector<2x8x8xf32>
    %cst_27 = arith.constant dense<0.000000e+00> : vector<2x8xf32>
    %46 = vector.multi_reduction <add>, %45, %cst_27 [2] : vector<2x8x8xf32> to vector<2x8xf32>
    %47 = vector.shape_cast %46 : vector<2x8xf32> to vector<2x8x1xf32>
    %48 = tpu.reciprocal %47 {approx = true} : vector<2x8x1xf32> -> vector<2x8x1xf32>
    %49 = vector.broadcast %48 : vector<2x8x1xf32> to vector<2x8x8xf32>
    %50 = arith.mulf %45, %49 : vector<2x8x8xf32>
    "tpu.trace_start"() <{level = 10 : i32, message = "bqk,bkd->bqd"}> : () -> ()
    %cst_28 = arith.constant dense<0.000000e+00> : vector<2x8x16xf32>
    %51 = tpu.matmul %50, %35, %cst_28 {dimension_numbers = #tpu.dot_dimension_numbers<[2], [1], [1], [2], [0, 0, 0, 1, 1, 2], [0], [0]>} : vector<2x8x8xf32>, vector<2x8x16xf32>, vector<2x8x16xf32> -> vector<2x8x16xf32>
    "tpu.trace_stop"() : () -> ()
    %52 = vector.extract_strided_slice %26 {offsets = [0, 0, 16], sizes = [2, 8, 16], strides = [1, 1, 1]} : vector<2x8x32xf32> to vector<2x8x16xf32>
    %53 = vector.extract_strided_slice %28 {offsets = [0, 0, 16], sizes = [2, 8, 16], strides = [1, 1, 1]} : vector<2x8x32xf32> to vector<2x8x16xf32>
    %54 = vector.extract_strided_slice %30 {offsets = [0, 0, 16], sizes = [2, 8, 16], strides = [1, 1, 1]} : vector<2x8x32xf32> to vector<2x8x16xf32>
    "tpu.trace_start"() <{level = 10 : i32, message = "bqd,bkd->bqk"}> : () -> ()
    %cst_29 = arith.constant dense<0.000000e+00> : vector<2x8x8xf32>
    %55 = tpu.matmul %52, %53, %cst_29 {dimension_numbers = #tpu.dot_dimension_numbers<[2], [2], [1], [1], [0, 0, 0, 1, 1, 1], [0], [0]>} : vector<2x8x16xf32>, vector<2x8x16xf32>, vector<2x8x8xf32> -> vector<2x8x8xf32>
    "tpu.trace_stop"() : () -> ()
    %cst_30 = arith.constant 2.500000e-01 : f32
    %56 = vector.broadcast %cst_30 : f32 to vector<2x8x8xf32>
    %57 = arith.mulf %55, %56 : vector<2x8x8xf32>
    %58 = vector.broadcast %32 : vector<2x1x8xf32> to vector<2x8x8xf32>
    %59 = arith.addf %57, %58 : vector<2x8x8xf32>
    %cst_31 = arith.constant dense<0xFF800000> : vector<2x8xf32>
    %60 = vector.multi_reduction <maximumf>, %59, %cst_31 [2] : vector<2x8x8xf32> to vector<2x8xf32>
    %61 = vector.shape_cast %60 : vector<2x8xf32> to vector<2x8x1xf32>
    %62 = vector.broadcast %61 : vector<2x8x1xf32> to vector<2x8x8xf32>
    %63 = arith.subf %59, %62 : vector<2x8x8xf32>
    %64 = math.exp %63 : vector<2x8x8xf32>
    %cst_32 = arith.constant dense<0.000000e+00> : vector<2x8xf32>
    %65 = vector.multi_reduction <add>, %64, %cst_32 [2] : vector<2x8x8xf32> to vector<2x8xf32>
    %66 = vector.shape_cast %65 : vector<2x8xf32> to vector<2x8x1xf32>
    %67 = tpu.reciprocal %66 {approx = true} : vector<2x8x1xf32> -> vector<2x8x1xf32>
    %68 = vector.broadcast %67 : vector<2x8x1xf32> to vector<2x8x8xf32>
    %69 = arith.mulf %64, %68 : vector<2x8x8xf32>
    "tpu.trace_start"() <{level = 10 : i32, message = "bqk,bkd->bqd"}> : () -> ()
    %cst_33 = arith.constant dense<0.000000e+00> : vector<2x8x16xf32>
    %70 = tpu.matmul %69, %54, %cst_33 {dimension_numbers = #tpu.dot_dimension_numbers<[2], [1], [1], [2], [0, 0, 0, 1, 1, 2], [0], [0]>} : vector<2x8x8xf32>, vector<2x8x16xf32>, vector<2x8x16xf32> -> vector<2x8x16xf32>
    "tpu.trace_stop"() : () -> ()
    %71 = tpu.concatenate %51, %70 in 2 : vector<2x8x16xf32>, vector<2x8x16xf32> -> vector<2x8x32xf32>
    %72 = vector.shape_cast %71 : vector<2x8x32xf32> to vector<16x32xf32>
    %c0_34 = arith.constant 0 : index
    %c0_35 = arith.constant 0 : index
    %c0_36 = arith.constant 0 : index
    %73 = vector.load %arg5[%c0_34, %c0_35, %c0_36] : memref<1x32x32xf32, #tpu.memory_space<vmem>>, vector<1x32x32xf32>
    %74 = vector.shape_cast %73 : vector<1x32x32xf32> to vector<32x32xf32>
    %cst_37 = arith.constant dense<0.000000e+00> : vector<16x32xf32>
    %75 = tpu.matmul %72, %74, %cst_37 {dimension_numbers = #tpu.dot_dimension_numbers<[1], [0], [0], [1], [0, 0, 1, 1], [], []>} : vector<16x32xf32>, vector<32x32xf32>, vector<16x32xf32> -> vector<16x32xf32>
    %76 = vector.broadcast %7 : vector<1x32xf32> to vector<16x32xf32>
    %77 = arith.addf %75, %76 : vector<16x32xf32>
    %78 = arith.addf %3, %77 : vector<16x32xf32>
    %cst_38 = arith.constant dense<0.000000e+00> : vector<16xf32>
    %79 = vector.multi_reduction <add>, %78, %cst_38 [1] : vector<16x32xf32> to vector<16xf32>
    %80 = vector.shape_cast %79 : vector<16xf32> to vector<16x1xf32>
    %cst_39 = arith.constant 3.200000e+01 : f32
    %81 = vector.broadcast %cst_39 : f32 to vector<16x1xf32>
    %82 = arith.divf %80, %81 : vector<16x1xf32>
    %83 = vector.broadcast %82 : vector<16x1xf32> to vector<16x32xf32>
    %84 = arith.subf %78, %83 : vector<16x32xf32>
    %85 = arith.mulf %84, %84 : vector<16x32xf32>
    %cst_40 = arith.constant dense<0.000000e+00> : vector<16xf32>
    %86 = vector.multi_reduction <add>, %85, %cst_40 [1] : vector<16x32xf32> to vector<16xf32>
    %87 = vector.shape_cast %86 : vector<16xf32> to vector<16x1xf32>
    %cst_41 = arith.constant 3.200000e+01 : f32
    %88 = vector.broadcast %cst_41 : f32 to vector<16x1xf32>
    %89 = arith.divf %87, %88 : vector<16x1xf32>
    %cst_42 = arith.constant 9.99999996E-13 : f32
    %90 = vector.broadcast %cst_42 : f32 to vector<16x1xf32>
    %91 = arith.addf %89, %90 : vector<16x1xf32>
    %92 = math.rsqrt %91 : vector<16x1xf32>
    %93 = vector.broadcast %92 : vector<16x1xf32> to vector<16x32xf32>
    %94 = arith.mulf %84, %93 : vector<16x32xf32>
    %95 = vector.broadcast %13 : vector<1x32xf32> to vector<16x32xf32>
    %96 = arith.mulf %94, %95 : vector<16x32xf32>
    %97 = vector.broadcast %15 : vector<1x32xf32> to vector<16x32xf32>
    %98 = arith.addf %96, %97 : vector<16x32xf32>
    %c0_43 = arith.constant 0 : index
    %c0_44 = arith.constant 0 : index
    %c0_45 = arith.constant 0 : index
    %99 = vector.load %arg6[%c0_43, %c0_44, %c0_45] : memref<1x32x64xf32, #tpu.memory_space<vmem>>, vector<1x32x64xf32>
    %100 = vector.shape_cast %99 : vector<1x32x64xf32> to vector<32x64xf32>
    %cst_46 = arith.constant dense<0.000000e+00> : vector<16x64xf32>
    %101 = tpu.matmul %98, %100, %cst_46 {dimension_numbers = #tpu.dot_dimension_numbers<[1], [0], [0], [1], [0, 0, 1, 1], [], []>} : vector<16x32xf32>, vector<32x64xf32>, vector<16x64xf32> -> vector<16x64xf32>
    %102 = vector.broadcast %9 : vector<1x64xf32> to vector<16x64xf32>
    %103 = arith.addf %101, %102 : vector<16x64xf32>
    %104 = arith.mulf %103, %103 : vector<16x64xf32>
    %105 = arith.mulf %103, %104 : vector<16x64xf32>
    %cst_47 = arith.constant 4.471500e-02 : f32
    %106 = vector.broadcast %cst_47 : f32 to vector<16x64xf32>
    %107 = arith.mulf %106, %105 : vector<16x64xf32>
    %108 = arith.addf %103, %107 : vector<16x64xf32>
    %cst_48 = arith.constant 0.797884583 : f32
    %109 = vector.broadcast %cst_48 : f32 to vector<16x64xf32>
    %110 = arith.mulf %109, %108 : vector<16x64xf32>
    %111 = math.tanh %110 : vector<16x64xf32>
    %cst_49 = arith.constant 1.000000e+00 : f32
    %112 = vector.broadcast %cst_49 : f32 to vector<16x64xf32>
    %113 = arith.addf %112, %111 : vector<16x64xf32>
    %cst_50 = arith.constant 5.000000e-01 : f32
    %114 = vector.broadcast %cst_50 : f32 to vector<16x64xf32>
    %115 = arith.mulf %114, %113 : vector<16x64xf32>
    %116 = arith.mulf %103, %115 : vector<16x64xf32>
    %c0_51 = arith.constant 0 : index
    %c0_52 = arith.constant 0 : index
    %c0_53 = arith.constant 0 : index
    %117 = vector.load %arg7[%c0_51, %c0_52, %c0_53] : memref<1x64x32xf32, #tpu.memory_space<vmem>>, vector<1x64x32xf32>
    %118 = vector.shape_cast %117 : vector<1x64x32xf32> to vector<64x32xf32>
    %cst_54 = arith.constant dense<0.000000e+00> : vector<16x32xf32>
    %119 = tpu.matmul %116, %118, %cst_54 {dimension_numbers = #tpu.dot_dimension_numbers<[1], [0], [0], [1], [0, 0, 1, 1], [], []>} : vector<16x64xf32>, vector<64x32xf32>, vector<16x32xf32> -> vector<16x32xf32>
    %120 = vector.broadcast %11 : vector<1x32xf32> to vector<16x32xf32>
    %121 = arith.addf %119, %120 : vector<16x32xf32>
    %122 = arith.addf %98, %121 : vector<16x32xf32>
    %cst_55 = arith.constant dense<0.000000e+00> : vector<16xf32>
    %123 = vector.multi_reduction <add>, %122, %cst_55 [1] : vector<16x32xf32> to vector<16xf32>
    %124 = vector.shape_cast %123 : vector<16xf32> to vector<16x1xf32>
    %cst_56 = arith.constant 3.200000e+01 : f32
    %125 = vector.broadcast %cst_56 : f32 to vector<16x1xf32>
    %126 = arith.divf %124, %125 : vector<16x1xf32>
    %127 = vector.broadcast %126 : vector<16x1xf32> to vector<16x32xf32>
    %128 = arith.subf %122, %127 : vector<16x32xf32>
    %129 = arith.mulf %128, %128 : vector<16x32xf32>
    %cst_57 = arith.constant dense<0.000000e+00> : vector<16xf32>
    %130 = vector.multi_reduction <add>, %129, %cst_57 [1] : vector<16x32xf32> to vector<16xf32>
    %131 = vector.shape_cast %130 : vector<16xf32> to vector<16x1xf32>
    %cst_58 = arith.constant 3.200000e+01 : f32
    %132 = vector.broadcast %cst_58 : f32 to vector<16x1xf32>
    %133 = arith.divf %131, %132 : vector<16x1xf32>
    %cst_59 = arith.constant 9.99999996E-13 : f32
    %134 = vector.broadcast %cst_59 : f32 to vector<16x1xf32>
    %135 = arith.addf %133, %134 : vector<16x1xf32>
    %136 = math.rsqrt %135 : vector<16x1xf32>
    %137 = vector.broadcast %136 : vector<16x1xf32> to vector<16x32xf32>
    %138 = arith.mulf %128, %137 : vector<16x32xf32>
    %139 = vector.broadcast %17 : vector<1x32xf32> to vector<16x32xf32>
    %140 = arith.mulf %138, %139 : vector<16x32xf32>
    %141 = vector.broadcast %19 : vector<1x32xf32> to vector<16x32xf32>
    %142 = arith.addf %140, %141 : vector<16x32xf32>
    %c0_60 = arith.constant 0 : index
    %c0_61 = arith.constant 0 : index
    %143 = vector.load %arg14[%c0_60, %c0_61] : memref<16x32xf32, #tpu.memory_space<vmem>>, vector<16x32xf32>
    tpu.vector_store %arg14[%c0_60, %c0_61], %142 {strides = array<i32>} : memref<16x32xf32, #tpu.memory_space<vmem>>, vector<16x32xf32>,
    %c1_i32 = arith.constant 1 : i32
    %144 = arith.cmpi eq, %arg0, %c1_i32 : i32
    %145 = arith.extui %144 : i1 to i32
    %c0_i32_62 = arith.constant 0 : i32
    %146 = arith.cmpi ne, %145, %c0_i32_62 : i32
    scf.if %146 {
      %c0_63 = arith.constant 0 : index
      %c0_64 = arith.constant 0 : index
      %147 = tpu.strided_load %arg14[%c0_63, %c0_64] {strides = array<i32: 8, 1>} : memref<16x32xf32, #tpu.memory_space<vmem>>, vector<2x32xf32>
      %c0_65 = arith.constant 0 : index
      %c0_66 = arith.constant 0 : index
      %148 = vector.load %arg9[%c0_65, %c0_66] : memref<32x32xf32, #tpu.memory_space<vmem>>, vector<32x32xf32>
      %cst_67 = arith.constant dense<0.000000e+00> : vector<2x32xf32>
      %149 = tpu.matmul %147, %148, %cst_67 {dimension_numbers = #tpu.dot_dimension_numbers<[1], [0], [0], [1], [0, 0, 1, 1], [], []>} : vector<2x32xf32>, vector<32x32xf32>, vector<2x32xf32> -> vector<2x32xf32>
      %c0_68 = arith.constant 0 : index
      %c0_69 = arith.constant 0 : index
      %150 = vector.load %arg10[%c0_68, %c0_69] : memref<1x32xf32, #tpu.memory_space<vmem>>, vector<1x32xf32>
      %151 = vector.broadcast %150 : vector<1x32xf32> to vector<2x32xf32>
      %152 = arith.addf %149, %151 : vector<2x32xf32>
      %153 = math.tanh %152 : vector<2x32xf32>
      %c0_70 = arith.constant 0 : index
      %c0_71 = arith.constant 0 : index
      %154 = vector.load %arg11[%c0_70, %c0_71] : memref<32x128xf32, #tpu.memory_space<vmem>>, vector<32x128xf32>
      %cst_72 = arith.constant dense<0.000000e+00> : vector<2x128xf32>
      %155 = tpu.matmul %153, %154, %cst_72 {dimension_numbers = #tpu.dot_dimension_numbers<[1], [0], [0], [1], [0, 0, 1, 1], [], []>} : vector<2x32xf32>, vector<32x128xf32>, vector<2x128xf32> -> vector<2x128xf32>
      %c0_73 = arith.constant 0 : index
      %c0_74 = arith.constant 0 : index
      %156 = vector.load %arg12[%c0_73, %c0_74] : memref<1x128xf32, #tpu.memory_space<vmem>>, vector<1x128xf32>
      %157 = vector.broadcast %156 : vector<1x128xf32> to vector<2x128xf32>
      %158 = arith.addf %155, %157 : vector<2x128xf32>
      %c0_75 = arith.constant 0 : index
      %c0_76 = arith.constant 0 : index
      %159 = vector.load %arg13[%c0_75, %c0_76] : memref<2x128xf32, #tpu.memory_space<vmem>>, vector<2x128xf32>
      tpu.vector_store %arg13[%c0_75, %c0_76], %158 {strides = array<i32>} : memref<2x128xf32, #tpu.memory_space<vmem>>, vector<2x128xf32>,
    } else {
    }
    return
  }
  func.func @transform_1(%arg0: i32) -> (i32, i32) {
    %c0_i32 = arith.constant 0 : i32
    %c0_i32_0 = arith.constant 0 : i32
    %c0_i32_1 = arith.constant 0 : i32
    return %c0_i32, %c0_i32_0 : i32, i32
  }
  func.func @transform_2(%arg0: i32) -> (i32, i32) {
    %c0_i32 = arith.constant 0 : i32
    %c0_i32_0 = arith.constant 0 : i32
    %c0_i32_1 = arith.constant 0 : i32
    return %c0_i32, %c0_i32_0 : i32, i32
  }
  func.func @transform_3(%arg0: i32) -> (i32, i32, i32) {
    %c0_i32 = arith.constant 0 : i32
    %c0_i32_0 = arith.constant 0 : i32
    %c0_i32_1 = arith.constant 0 : i32
    return %arg0, %c0_i32, %c0_i32_0 : i32, i32, i32
  }
  func.func @transform_4(%arg0: i32) -> (i32, i32, i32) {
    %c0_i32 = arith.constant 0 : i32
    %c0_i32_0 = arith.constant 0 : i32
    %c0_i32_1 = arith.constant 0 : i32
    return %arg0, %c0_i32, %c0_i32_0 : i32, i32, i32
  }
  func.func @transform_5(%arg0: i32) -> (i32, i32, i32) {
    %c0_i32 = arith.constant 0 : i32
    %c0_i32_0 = arith.constant 0 : i32
    %c0_i32_1 = arith.constant 0 : i32
    return %arg0, %c0_i32, %c0_i32_0 : i32, i32, i32
  }
  func.func @transform_6(%arg0: i32) -> (i32, i32, i32) {
    %c0_i32 = arith.constant 0 : i32
    %c0_i32_0 = arith.constant 0 : i32
    %c0_i32_1 = arith.constant 0 : i32
    return %arg0, %c0_i32, %c0_i32_0 : i32, i32, i32
  }
  func.func @transform_7(%arg0: i32) -> (i32, i32, i32) {
    %c0_i32 = arith.constant 0 : i32
    %c0_i32_0 = arith.constant 0 : i32
    %c0_i32_1 = arith.constant 0 : i32
    return %arg0, %c0_i32, %c0_i32_0 : i32, i32, i32
  }
  func.func @transform_8(%arg0: i32) -> (i32, i32) {
    %c0_i32 = arith.constant 0 : i32
    %c0_i32_0 = arith.constant 0 : i32
    %c0_i32_1 = arith.constant 0 : i32
    return %c0_i32, %c0_i32_0 : i32, i32
  }
  func.func @transform_9(%arg0: i32) -> (i32, i32) {
    %c0_i32 = arith.constant 0 : i32
    %c0_i32_0 = arith.constant 0 : i32
    %c0_i32_1 = arith.constant 0 : i32
    return %c0_i32, %c0_i32_0 : i32, i32
  }
  func.func @transform_10(%arg0: i32) -> (i32, i32) {
    %c0_i32 = arith.constant 0 : i32
    %c0_i32_0 = arith.constant 0 : i32
    %c0_i32_1 = arith.constant 0 : i32
    return %c0_i32, %c0_i32_0 : i32, i32
  }
  func.func @transform_11(%arg0: i32) -> (i32, i32) {
    %c0_i32 = arith.constant 0 : i32
    %c0_i32_0 = arith.constant 0 : i32
    %c0_i32_1 = arith.constant 0 : i32
    return %c0_i32, %c0_i32_0 : i32, i32
  }
  func.func @transform_12(%arg0: i32) -> (i32, i32) {
    %c0_i32 = arith.constant 0 : i32
    %c0_i32_0 = arith.constant 0 : i32
    %c0_i32_1 = arith.constant 0 : i32
    return %c0_i32, %c0_i32_0 : i32, i32
  }
}

</mosaic_0001>

<bundles_post_ra>
// kernel: tpu_custom_call.1
= control target key start
LH: loop header
LB: loop body
LE: loop exit
PB: predicated region body
PF: predicated region fallthrough
CT: control target
= control target key end

     0   :  { %s3050_s0 = inlined_call_operand.hbm [shape: f32[16,32], index: 0, kind: input, shape index: {}]   ;;  %s3051_s1 = inlined_call_operand.hbm [shape: f32[2,8], index: 1, kind: input, shape index: {}]   ;;  %s3052_s2 = inlined_call_operand.vmem [shape: f32[2,32], index: 2, kind: input, shape index: {}]   ;;  %s3053_s3 = inlined_call_operand.vmem [shape: f32[2,32,96], index: 3, kind: input, shape index: {}]   ;;  %s3054_s4 = inlined_call_operand.vmem [shape: f32[2,32,32], index: 4, kind: input, shape index: {}]   ;;  %s3055_s5 = inlined_call_operand.vmem [shape: f32[2,32,64], index: 5, kind: input, shape index: {}]   ;;  %s3056_s6 = inlined_call_operand.vmem [shape: f32[2,64,32], index: 6, kind: input, shape index: {}]   ;;  %s3057_s7 = inlined_call_operand.hbm [shape: f32[2,8,96], index: 7, kind: input, shape index: {}]   ;;  %s3058_s8 = inlined_call_operand.hbm [shape: f32[32,32], index: 8, kind: input, shape index: {}]   ;;  %s3059_s9 = inlined_call_operand.vmem [shape: f32[1,32], index: 9, kind: input, shape index: {}]   ;;  %s3060_s10 = inlined_call_operand.hbm [shape: f32[32,128], index: 10, kind: input, shape index: {}]   ;;  %s3061_s11 = inlined_call_operand.vmem [shape: f32[1,128], index: 11, kind: input, shape index: {}]   ;;  %s3062_s12 = inlined_call_operand.hbm [shape: f32[2,128], index: 12, kind: output, shape index: {}]  }
   0x1   :  { %3066 = sst [smem:[#allocation23_spill]] %s3051_s1 }
   0x2   :  { %3067 = sst [smem:[#allocation24_spill]] %s3058_s8 }
   0x3   :  { %3068 = sst [smem:[#allocation25_spill]] %s3060_s10 }
   0x4   :  { %17 = vsyncpa [#allocation4], 0 }
   0x5   :  { %18 = vsyncpa [#allocation7], 0 }
   0x6   :  { %20 = vsyncpa [#allocation7 + $0x1], 0 }
   0x7   :  { %21 = vsyncpa [#allocation10], 0 }
   0x8   :  { %22 = vsyncpa [#allocation5], 0  ;;  %s2717_s21 = smov 0   ;;  %s2719_s22 = smov 0  }
   0x9   :  { %s2721_s23 = smov 0   ;;  %s2723_s24 = smov 0  }
   0xa LB: > { %s2736_s25 = sadd.s32 4294967295, %s2631_s24   ;;  %p194_p0 = scmp.ne.s32.totalorder %s2623_s22, %s2619_s21  ;;  %s2631_s24 = sphi %s2723_s24, %s3088_s24   ;;  %s2627_s23 = sphi %s2721_s23, %s3087_s23   ;;  %s2623_s22 = sphi %s2719_s22, %s3086_s22   ;;  %s2619_s21 = sphi %s2717_s21, %s3085_s21  }
   0xb   : > { %p3063_p1 = scmp.eq.s32.totalorder %s2736_s25, 0  ;;  %p2073_p2 = scmp.ge.s32.totalorder %s2631_s24, 1 }
   0xc   : > { %p310_p3 = scmp.lt.s32.totalorder %s2631_s24, 3  ;;  %s2633_s28 = smov [#allocation8]  }
   0xd   : > { %p2745_p5 = por %p3063_p1, %p194_p0  ;;  %s336_s29 = sshll.u32 %s2633_s28, 4  ;;  %s337_s29 = int_to_ptr.vmem [resolvable:$true] %s336_s29 }
   0xe   : > { %p2749_p6 = pnand %p2073_p2, %p310_p3  ;;  %s2634_s13 = smov [#allocation3]  }
   0xf   : > { %s3069_s26 = scalar_select %p2745_p5, 1, 0 }
  0x10   : > { %s3070_s27 = scalar_select %p2749_p6, 1, 0 }
  0x11   : > { %p2322_p7 = pneg %p2749_p6  ;;  %s323_s14 = sshll.u32 %s2634_s13, 4  ;;  %s324_s14 = int_to_ptr.vmem [resolvable:$true] %s323_s14 }
  0x12   : > { %s2635_s15 = smov [#allocation9]   ;;  %s2440_s17 = scalar_lea.vmem %s337_s29, 512 }
  0x13   : > { %p2757_p8 = pnand %p2322_p7, %p3063_p1  ;;  %s352_s16 = sshll.u32 %s2635_s15, 4  ;;  %s353_s16 = int_to_ptr.vmem [resolvable:$true] %s352_s16 }
  0x14   : > { %p2441_p10 = scmp.ne.s32.totalorder %s337_s29, %s2440_s17  ;;  %p2448_p13 = scmp.lt.s32.totalorder %s337_s29, %s337_s29 }
  0x15   : > { %p2431_p9 = pneg %p2757_p8  ;;  %p2449_p0 = scmp.lt.s32.totalorder %s2440_s17, %s2440_s17 }
  0x17   : > { %p2443_p11 = pnand %p2441_p10, %p2431_p9  ;;  %p2450_p2 = por %p2449_p0, %p2448_p13 }
  0x19   : > { %p2444_p12 = pneg %p2443_p11 }
  0x1b   : > { %p2451_p3 = pnand %p2450_p2, %p2444_p12 }
  0x1d   : > { %2454 = shalt.err (!%p2451_p3)
}
  0x1e   : > { %s2636_s18 = smov 128   ;;  %s2637_s19 = smov 8  }
  0x1f   : > { %s3072_s8 = sld [smem:[#allocation24_spill]]  ;;  %s2466_s28 = scalar_lea.vmem %s324_s14, 32 }
  0x20   : > { %p2467_p7 = scmp.ne.s32.totalorder %s324_s14, %s2466_s28  ;;  %p2474_p4 = scmp.lt.s32.totalorder %s324_s14, %s324_s14 }
  0x21   : > { %p2475_p1 = scmp.lt.s32.totalorder %s2466_s28, %s2466_s28 }
  0x22   : > { %p2469_p10 = pnand %p2467_p7, %p2431_p9 }
  0x23   : > { %p2476_p13 = por %p2475_p1, %p2474_p4 }
  0x24   : > { %p2470_p11 = pneg %p2469_p10 }
  0x25   : > { %2328 = dma.hbm_to_vmem [thread:$0]  (!%p2757_p8), %s3072_s8, 512, %s337_s29, [#allocation7], %s2636_s18, %s2636_s18, %s2637_s19  }
  0x26   : > { %p2477_p12 = pnand %p2476_p13, %p2470_p11 }
  0x28   : > { %2480 = shalt.err (!%p2477_p12)
}
  0x29   : > { %s3073_s1 = sld [smem:[#allocation23_spill]]  ;;  %s2492_s29 = scalar_lea.vmem %s353_s16, 512 }
  0x2a   : > { %p2493_p0 = scmp.ne.s32.totalorder %s353_s16, %s2492_s29  ;;  %p2500_p7 = scmp.lt.s32.totalorder %s353_s16, %s353_s16 }
  0x2b   : > { %p2501_p10 = scmp.lt.s32.totalorder %s2492_s29, %s2492_s29 }
  0x2c   : > { %p2495_p2 = pnand %p2493_p0, %p2431_p9 }
  0x2d   : > { %p2502_p5 = por %p2501_p10, %p2500_p7 }
  0x2e   : > { %p2496_p3 = pneg %p2495_p2 }
  0x2f   : > { %2325 = dma.hbm_to_vmem [thread:$0]  (!%p2757_p8), %s3073_s1, 32, %s324_s14, [#allocation4]  }
  0x30   : > { %p2503_p1 = pnand %p2502_p5, %p2496_p3 }
  0x32   : > { %2506 = shalt.err (!%p2503_p1)
}
  0x33   : > { %s3074_s10 = sld [smem:[#allocation25_spill]]  ;;  %s2788_s14 = sadd.s32 1, %s2631_s24  }
  0x34   : > { %s178_s21 = ssub.s32 %s2631_s24, %s2788_s14  ;;  %s181_s30 = sadd.s32 1, %s2627_s23 }
  0x35   : > { %p179_p4 = scmp.eq.s32.totalorder %s178_s21, 0  ;;  %p188_p5 = scmp.ne.s32.totalorder %s2627_s23, %s2623_s22 }
  0x36   : > { %p189_p9 = scmp.eq.s32.totalorder %s2631_s24, 0  ;;  %p2339_p11 = scmp.lt.s32.totalorder %s2631_s24, 2 }
  0x37   : > { %s2798_s28 = scalar_select %p179_p4, %s2627_s23, %s181_s30  }
  0x38   : > { %p190_p13 = por %p189_p9, %p188_p5  ;;  %s401_s13 = sand.u32 1, %s2631_s24  }
  0x39   : > { %2331 = dma.hbm_to_vmem [thread:$0]  (!%p2757_p8), %s3074_s10, 512, %s353_s16, [#allocation10], %s2636_s18, %s2636_s18, %s2637_s19  }
  0x3a   : > { %s403_s15 = sand.u32 1, %s2627_s23   ;;  %s2079_s17 = sshll.u32 %s2631_s24, 7 }
  0x3b   : > { %s2078_s29 = sshll.u32 %s403_s15, 3  ;;  %s2806_s16 = scalar_lea.hbm %s3057_s7, %s2079_s17 }
  0x3c   : > { %s405_s18 = scalar_lea.vmem [#allocation6], %s2078_s29  ;;  %p2808_p8 = pnand %p2339_p11, %p190_p13 }
  0x3d   : > { %s412_s19 = sshll.u32 %s405_s18, 4  ;;  %s402_s30 = scalar_lea.sflag [#allocation7], %s401_s13  ;;  %s413_s19 = int_to_ptr.vmem [resolvable:$true] %s412_s19 }
  0x3e   : > { %s2507_s8 = scalar_lea.hbm %s2806_s16, 128  ;;  %p2509_p0 = pneg %p2808_p8 }
  0x3f   : > { %p2508_p12 = scmp.ne.s32.totalorder %s2806_s16, %s2507_s8  ;;  %s2512_s15 = scalar_lea.hbm %s3057_s7, 256 }
  0x40   : > { %p2513_p7 = scmp.lt.s32.totalorder %s2806_s16, %s3057_s7  ;;  %p2514_p10 = scmp.lt.s32.totalorder %s2512_s15, %s2507_s8 }
  0x41   : > { %p2510_p2 = pnand %p2509_p0, %p2508_p12 }
  0x42   : > { %p2515_p1 = por %p2514_p10, %p2513_p7 }
  0x43   : > { %p2511_p3 = pneg %p2510_p2 }
  0x45   : > { %p2516_p4 = pnand %p2515_p1, %p2511_p3 }
  0x47   : > { %2519 = shalt.err (!%p2516_p4)
}
  0x48   : > { %s2520_s20 = scalar_lea.vmem %s413_s19, 128  ;;  %s2638_s13 = smov [#allocation6]  }
  0x49   : > { %p2521_p5 = scmp.ne.s32.totalorder %s413_s19, %s2520_s20  ;;  %s2525_s18 = sshll.u32 %s2638_s13, 4  ;;  %s2526_s18 = int_to_ptr.vmem [resolvable:$false] %s2525_s18 }
  0x4a   : > { %s2527_s10 = scalar_lea.vmem %s2526_s18, 256  ;;  %p2528_p13 = scmp.lt.s32.totalorder %s413_s19, %s2526_s18 }
  0x4b   : > { %p2523_p9 = pnand %p2521_p5, %p2509_p0  ;;  %p2529_p12 = scmp.lt.s32.totalorder %s2527_s10, %s2520_s20 }
  0x4d   : > { %p2524_p11 = pneg %p2523_p9  ;;  %p2530_p2 = por %p2529_p12, %p2528_p13 }
  0x4f   : > { %p2531_p6 = pnand %p2530_p2, %p2524_p11 }
  0x51   : > { %2534 = shalt.err (!%p2531_p6)
}
  0x52   : > { %2335 = dma.hbm_to_vmem [thread:$0]  (!%p2808_p8), %s2806_s16, 128, %s413_s19, %s402_s30  }
  0x53   : > { %p3076_p3 = scmp.ne.s32.totalorder %s3070_s27, 0 }
  0x54   : > { %p3077_p7 = scmp.eq.s32.totalorder (!%p3076_p3), %s2736_s25, 0 }
  0x55   : > { %421 = sbr.rel (%p3076_p3) target bundleno = 3771 (0xebb), region = 64 }
  0x5a   : > { %2596 = dma.done.wait (%p3077_p7), [#allocation4], 32   ;;  %p3078_p0 = pmov %p3077_p7 }
  0x5b   : > { %s427_s8 = sand.u32 1, %s2736_s25   ;;  %s429_s10 = sand.u32 1, %s2623_s22  }
  0x5c   : > { %2598 = vsyncadd (%p3078_p0), [#allocation4], 4294967264  ;;  %s2082_s1 = sshll.u32 %s429_s10, 3  ;;  %s428_s24 = scalar_lea.sflag [#allocation7], %s427_s8 }
  0x5d   : > { %s2834_s15 = scalar_lea.vmem [#allocation6], %s2082_s1  ;;  %p3079_p6 = scmp.ne.s32.totalorder %s3069_s26, 0 }
  0x5f   : > { %2600 = dma.done.wait (%p3079_p6), %s428_s24, 128  }
  0x60   : > { %2602 = vsyncadd (%p3079_p6), %s428_s24, 4294967168  ;;  %p3080_p8 = pmov %p3078_p0 }
  0x61   : > { %p3081_p10 = pmov %p3078_p0 }
  0x62   : > { %2604 = dma.done.wait (%p3080_p8), [#allocation7], 512  }
  0x63   : > { %2606 = vsyncadd (%p3081_p10), [#allocation7], 4294966784  ;;  %p3082_p1 = pmov %p3078_p0 }
  0x64   : > { %p3083_p4 = pmov %p3078_p0 }
  0x65   : > { %2608 = dma.done.wait (%p3082_p1), [#allocation10], 512  }
  0x66   : > { %2610 = vsyncadd (%p3083_p4), [#allocation10], 4294966784  ;;  %p493_p5 = scmp.lt.s32.totalorder %s2736_s25, 1  ;;  %p3084_p9 = scmp.ne.s32.totalorder %s2736_s25, 0 }
  0x68   : > { %s494_s27 = scalar_select %p493_p5, %s2736_s25, 1 }
  0x69   : > { %516 = sbr.rel (%p3084_p9) target bundleno = 436 (0x1b4), region = 84 }
  0x6a   : > { %s2132_s16 = sshll.u32 %s494_s27, 5  ;;  %s2135_s19 = sshll.u32 %s494_s27, 6 }
  0x6b   : > { %s2853_s30 = scalar_lea.vmem %s3053_s3, %s2132_s16  ;;  %s2858_s20 = scalar_lea.vmem %s3054_s4, %s2132_s16 }
  0x6c   : > { %s2863_s8 = scalar_lea.vmem %s3055_s5, %s2132_s16  ;;  %s2868_s24 = scalar_lea.vmem %s3056_s6, %s2135_s19 }
  0x6e   : > { %s2639_s27 = smov [#allocation2]  }
  0x6f   : > { %s524_s26 = sshll.u32 %s2639_s27, 4  ;;  %s525_s26 = int_to_ptr.vmem [resolvable:$true] %s524_s26 }
  0x70   : > { %s2543_s21 = scalar_lea.vmem %s525_s26, 256  ;;  %p2548_p13 = scmp.lt.s32.totalorder %s525_s26, %s525_s26 }
  0x71   : > { %p2544_p11 = scmp.ne.s32.totalorder %s525_s26, %s2543_s21  ;;  %p2549_p12 = scmp.lt.s32.totalorder %s2543_s21, %s2543_s21 }
  0x73   : > { %p2550_p2 = por %p2549_p12, %p2548_p13 }
  0x75   : > { %p2551_p3 = pnand %p2550_p2, %p2544_p11 }
  0x77   : > { %2554 = shalt.err (!%p2551_p3)  }
  0x78   : > { %527 = dma.hbm_to_vmem [thread:$0]  %s3050_s0, 256, %s525_s26, [#allocation12] }
  0x79   : > { %2611 = dma.done.wait [#allocation12], 256 }
  0x7a   : > { %2612 = vsyncadd [#allocation12], 4294967040  ;;  %v532_v0 = vld [vmem:[#allocation2] sm:$0xff]  ;;  %vm534_vm0 = vcmask 261120   ;;  %v533_v1 = vld [vmem:[#allocation2 + $0x8] sm:$0xff]  ;;  %v562_v18 = vlaneseq }
  0x7b   : > { %v535_v2 = vsel %vm534_vm0, %v532_v0, 0.0  ;;  %v538_v3 = vsel %vm534_vm0, %v533_v1, 0.0  ;;  %v531_v23 = vld [vmem:[%s3052_s2] sm:$0x3] }
  0x7c   : > { %536 = vadd.xlane.f32.xlu0 %v535_v2  ;;  %v563_v21 = vshrl.u32 %v562_v18, 7 }
  0x7e   : > { %v564_v22 = vsub.s32 0, %v563_v21  ;;  %v570_v24 = vsub.s32 1, %v563_v21 }
  0x80   : > { %539 = vadd.xlane.f32.xlu0 %v538_v3  ;;  %v565_v25 = vrot.slane %v531_v23, %v564_v22  ;;  %v571_v28 = vrot.slane %v531_v23, %v570_v24 }
 0x105   : > { %v537_v4 = vpop.xlane.xlu0 %536 }
 0x106   : > { %v542_v5 = vmul.f32 0.03125, %v537_v4 }
 0x108   : > { %v544_v6 = vsub.f32 %v532_v0, %v542_v5 }
 0x109   : > { %v540_v7 = vpop.xlane.xlu0 %539 }
 0x10a   : > { %v543_v8 = vmul.f32 0.03125, %v540_v7  ;;  %v546_v9 = vmul.f32 %v544_v6, %v544_v6 }
 0x10c   : > { %v545_v10 = vsub.f32 %v533_v1, %v543_v8  ;;  %v548_v11 = vsel %vm534_vm0, %v546_v9, 0.0 }
 0x10d   : > { %549 = vadd.xlane.f32.xlu1 %v548_v11 }
 0x10e   : > { %v547_v12 = vmul.f32 %v545_v10, %v545_v10 }
 0x110   : > { %v551_v13 = vsel %vm534_vm0, %v547_v12, 0.0 }
 0x111   : > { %552 = vadd.xlane.f32.xlu1 %v551_v13 }
 0x196   : > { %v550_v14 = vpop.xlane.xlu1 %549 }
 0x197   : > { %v554_v15 = vmul.f32 0.03125, %v550_v14 }
 0x199   : > { %v556_v16 = vadd.f32 1e-12, %v554_v15 }
 0x19a   : > { %v553_v17 = vpop.xlane.xlu1 %552 }
 0x19b   : > { %2395 = vrsqrt.f32 %v556_v16  ;;  %v555_v19 = vmul.f32 0.03125, %v553_v17 }
 0x19d   : > { %v557_v20 = vadd.f32 1e-12, %v555_v19 }
 0x19f   : > { %2397 = vrsqrt.f32 %v557_v20 }
 0x1a8   : > { %v2396_v26 = vpop.eup %2395 }
 0x1a9   : > { %v560_v27 = vmul.f32 %v2396_v26, %v544_v6 }
 0x1ab   : > { %v566_v29 = vmul.f32 %v565_v25, %v560_v27 }
 0x1ac   : > { %v2398_v30 = vpop.eup %2397 }
 0x1ad   : > { %v572_v31 = vadd.f32 %v571_v28, %v566_v29  ;;  %v561_v32 = vmul.f32 %v2398_v30, %v545_v10 }
 0x1af   : > { %574 = vst.msk [vmem:[#allocation2] sm:$0xff] %vm534_vm0, %v572_v31  ;;  %v567_v33 = vmul.f32 %v565_v25, %v561_v32 }
 0x1b1   : > { %v573_v34 = vadd.f32 %v571_v28, %v567_v33 }
 0x1b3   : > { %575 = vst.msk [vmem:[#allocation2 + $0x8] sm:$0xff] %vm534_vm0, %v573_v34 }
 0x1b4 PF: > { %v589_v35 = vld [vmem:[%s2853_s30 + $0x18] sm:$0xff]  ;;  %v588_v36 = vld [vmem:[%s2853_s30 + $0x10] sm:$0xff]  ;;  %vm594_vm1 = vcmask 261120   ;;  %v587_v38 = vld [vmem:[%s2853_s30 + $0x8] sm:$0xff]  ;;  %v2640_v41 = vmov 0.0   ;;  %vm2641_vm2 = vmmov 0   ;;  %v689_v51 = vlaneseq }
 0x1b5   : > { %2190 = vmatprep.subr.mxu1 %v589_v35  ;;  %v586_v39 = vld [vmem:[%s2853_s30] sm:$0xff]  ;;  %2211 = vmatprep.subr.mxu0 %v2640_v41  ;;  %v2094_v43 = vld [vmem:[%s2834_s15] ss:$0 sm:$0xff]  ;;  %s2642_s30 = smov 96   ;;  %vm703_vm3 = vcmask 130048   ;;  %vm869_vm4 = vcmask 64512  }
 0x1b6   : > { %v2886_v37 = vld [vmem:[#allocation2] sm:$0xff]  ;;  %2191 = vmatpush3.msra.mxu1 %v589_v35  ;;  %2213 = vmatprep.mubr.msk.f32.mxu0 %vm2641_vm2, %v2640_v41  ;;  %v2643_v49 = vmov 1966171168   ;;  %v690_v53 = vshrl.u32 %v689_v51, 7  ;;  %s2644_s13 = smov 64   ;;  %s2645_s18 = smov 80  }
 0x1b7   : > { %2198 = vmatprep.mubr.msk.f32.mxu1 %vm594_vm1, %v2886_v37  ;;  %2192 = vmatprep.subr.mxu1 %v588_v36  ;;  %v687_v50 = vunpack.c.l.s4 %v2643_v49  ;;  %v2097_v55 = vld.sshfl [vmem:[#allocation3] sm:$0x11 pattern:$0x75316420]  ;;  %s2646_s10 = smov 112   ;;  %s2647_s1 = smov 48  }
 0x1b8   : > { %2193 = vmatpush3.msra.mxu1 %v588_v36  ;;  %v685_v56 = vcombine.high %v2097_v55, %v2097_v55  ;;  %v859_v58 = vsub.s32 0, %v690_v53  ;;  %s2648_s27 = smov 16   ;;  %vm1637_vm5 = vcmask 523264   ;;  %p2123_p7 = scmp.ne.s32.totalorder %s2736_s25, 1 }
 0x1b9   : > { %2194 = vmatprep.subr.mxu1 %v587_v38  ;;  %v688_v52 = vunpack.c.0.s8 %v687_v50 }
 0x1ba   : > { %2195 = vmatpush3.msra.mxu1 %v587_v38  ;;  %v2892_v40 = vld [vmem:[#allocation2 + $0x8] sm:$0xff] }
 0x1bb   : > { %2196 = vmatprep.subr.mxu1 %v586_v39  ;;  %v691_v54 = vsub.s32 %v688_v52, %v690_v53 }
 0x1bc   : > { %2197 = vmatpush3.msra.mxu1 %v586_v39 }
 0x1bd   : > { %2199 = vmatmul.mubr.msk.f32.vlgmr.msra.gmra.mxu1 %vm594_vm1, %v2892_v40  ;;  %2201 = vmatprep.subr.mxu1 %v2640_v41  ;;  %v692_v57 = vrot.slane %v2097_v55, %v691_v54  ;;  %v699_v60 = vrot.slane %v685_v56, %v691_v54 }
 0x1be   : > { %2203 = vmatprep.mubr.msk.f32.mxu1 %vm2641_vm2, %v2640_v41 }
 0x1bf   : > { %v2921_v59 = vrot.slane %v692_v57, %v859_v58  ;;  %v2924_v1 = vrot.slane %v699_v60, %v859_v58 }
 0x27d   : > { %v2200_v42 = vpop.f32.mrf.mxu1 }
 0x27e   : > { %v2906_v46 = vadd.f32 %v2200_v42, %v2094_v43 }
 0x27f   : > { %v667_v44 = vpop.f32.mrf.mxu1 }
 0x280   : > { %v2903_v45 = vadd.f32 %v2094_v43, %v667_v44 }
 0x282   : > { %701 = vrot.lane.b32.xlu0 %v2903_v45, %s2642_s30 }
 0x286   : > { %779 = vrot.lane.b32.xlu0 %v2906_v46, %s2642_s30 }
 0x2f4   : > { %v702_v47 = vpop.permute.xlu0 %701 }
 0x2f5   : > { %2202 = vmatpush3.xpose.msk.msra.mxu1 %vm703_vm3, %v702_v47 }
 0x2f6   : > { %2206 = vmatprep.subr.mxu1 %v2640_v41 }
 0x2f8   : > { %2204 = vmatmul.mubr.msk.f32.vlgmr.msra.gmra.mxu1 %vm703_vm3, %v2903_v45  ;;  %v780_v48 = vpop.permute.xlu0 %779 }
 0x2f9   : > { %2207 = vmatpush3.xpose.msk.msra.mxu1 %vm703_vm3, %v780_v48  ;;  %2208 = vmatprep.mubr.msk.f32.mxu1 %vm2641_vm2, %v2640_v41 }
 0x2fa   : > { %2216 = vmatprep.subr.mxu1 %v2640_v41 }
 0x2fc   : > { %2209 = vmatmul.mubr.msk.f32.vlgmr.msra.gmra.mxu1 %vm703_vm3, %v2906_v46 }
 0x2fd   : > { %2218 = vmatprep.mubr.msk.f32.mxu1 %vm2641_vm2, %v2640_v41 }
 0x3b8   : > { %v774_v61 = vpop.f32.mrf.mxu1 }
 0x3b9   : > { %v855_v62 = vmul.f32 0.25, %v774_v61 }
 0x3ba   : > { %v2205_v63 = vpop.f32.mrf.mxu1 }
 0x3bb   : > { %v867_v0 = vadd.f32 %v2921_v59, %v855_v62 }
 0x3bc   : > { %v851_v2 = vpop.f32.mrf.mxu1 }
 0x3bd   : > { %v856_v3 = vmul.f32 0.25, %v851_v2  ;;  %v870_v4 = vsel %vm869_vm4, %v867_v0, -inf  ;;  %v1390_v2 = vld [vmem:[%s2858_s20 + $0x10] sm:$0xff] }
 0x3be   : > { %871 = vmax.xlane.f32.xlu1 %v870_v4  ;;  %v2210_v5 = vpop.f32.mrf.mxu1 }
 0x3bf   : > { %v868_v6 = vadd.f32 %v2924_v1, %v856_v3  ;;  %v1388_v3 = vld [vmem:[%s2858_s20] sm:$0xff] }
 0x3c1   : > { %v873_v7 = vsel %vm869_vm4, %v868_v6, -inf }
 0x3c2   : > { %874 = vmax.xlane.f32.xlu1 %v873_v7 }
 0x3d3   : > { %892 = vrot.lane.b32.xlu1 %v2903_v45, %s2644_s13 }
 0x3d7   : > { %968 = vrot.lane.b32.xlu1 %v2906_v46, %s2644_s13 }
 0x3db   : > { %1046 = vrot.lane.b32.xlu1 %v2903_v45, %s2645_s18 }
 0x3df   : > { %1124 = vrot.lane.b32.xlu1 %v2906_v46, %s2645_s18 }
 0x447   : > { %v872_v8 = vpop.xlane.xlu1 %871 }
 0x448   : > { %v876_v9 = vsub.f32 %v867_v0, %v872_v8 }
 0x44a   : > { %v878_v10 = vmul.f32 1.442695, %v876_v9 }
 0x44b   : > { %v875_v11 = vpop.xlane.xlu1 %874 }
 0x44c   : > { %2399 = vpow2.f32 %v878_v10  ;;  %v877_v12 = vsub.f32 %v868_v6, %v875_v11 }
 0x44e   : > { %v880_v13 = vmul.f32 1.442695, %v877_v12  ;;  %v2110_v12 = vld [vmem:[%s2834_s15 + $0x1] ss:$0 sm:$0xff] }
 0x44f   : > { %v893_v14 = vpop.permute.xlu1 %892 }
 0x450   : > { %2401 = vpow2.f32 %v880_v13  ;;  %2212 = vmatpush3.msra.mxu0 %v893_v14 }
 0x451   : > { %2221 = vmatprep.subr.mxu0 %v2640_v41 }
 0x453   : > { %v969_v15 = vpop.permute.xlu1 %968 }
 0x454   : > { %2217 = vmatpush3.msra.mxu1 %v969_v15 }
 0x455   : > { %2226 = vmatprep.subr.mxu1 %v2640_v41 }
 0x457   : > { %v1047_v20 = vpop.permute.xlu1 %1046 }
 0x459   : > { %v2400_v16 = vpop.eup %2399 }
 0x45a   : > { %v882_v17 = vsel %vm869_vm4, %v2400_v16, 0.0 }
 0x45b   : > { %883 = vadd.xlane.f32.xlu0 %v882_v17  ;;  %v1125_v21 = vpop.permute.xlu1 %1124 }
 0x45d   : > { %v2402_v18 = vpop.eup %2401 }
 0x45e   : > { %v885_v19 = vsel %vm869_vm4, %v2402_v18, 0.0 }
 0x45f   : > { %886 = vadd.xlane.f32.xlu1 %v885_v19 }
 0x470   : > { %1122 = vrot.lane.b32.xlu1 %v2906_v46, %s2646_s10 }
 0x471   : > { %1044 = vrot.lane.b32.xlu0 %v2903_v45, %s2646_s10 }
 0x4e4   : > { %v884_v22 = vpop.xlane.xlu0 %883 }
 0x4e5   : > { %2403 = vrcp.f32 %v884_v22 }
 0x4e8   : > { %v887_v23 = vpop.xlane.xlu1 %886  ;;  %v1045_v28 = vpop.permute.xlu0 %1044 }
 0x4e9   : > { %2405 = vrcp.f32 %v887_v23 }
 0x4ec   : > { %v1123_v29 = vpop.permute.xlu1 %1122 }
 0x4f2   : > { %v2404_v24 = vpop.eup %2403 }
 0x4f3   : > { %v890_v25 = vmul.f32 %v2404_v24, %v2400_v16 }
 0x4f5   : > { %2214 = vmatmul.mubr.msk.f32.vlgmr.msra.gmra.mxu0 %vm869_vm4, %v890_v25 }
 0x4f6   : > { %v2406_v26 = vpop.eup %2405  ;;  %2222 = vmatpush3.xpose.msk.msra.mxu0 %vm703_vm3, %v1047_v20  ;;  %2223 = vmatprep.mubr.msk.f32.mxu0 %vm2641_vm2, %v2640_v41 }
 0x4f7   : > { %v891_v27 = vmul.f32 %v2406_v26, %v2402_v18  ;;  %2231 = vmatprep.subr.mxu0 %v2640_v41 }
 0x4f9   : > { %2219 = vmatmul.mubr.msk.f32.vlgmr.msra.gmra.mxu1 %vm869_vm4, %v891_v27  ;;  %2224 = vmatmul.mubr.msk.f32.vlgmr.msra.gmra.mxu0 %vm703_vm3, %v1045_v28 }
 0x4fa   : > { %2227 = vmatpush3.xpose.msk.msra.mxu1 %vm703_vm3, %v1125_v21  ;;  %2228 = vmatprep.mubr.msk.f32.mxu1 %vm2641_vm2, %v2640_v41 }
 0x4fb   : > { %2236 = vmatprep.subr.mxu1 %v2640_v41  ;;  %2233 = vmatprep.mubr.msk.f32.mxu0 %vm2641_vm2, %v2640_v41 }
 0x4fd   : > { %2229 = vmatmul.mubr.msk.f32.vlgmr.msra.gmra.mxu1 %vm703_vm3, %v1123_v29  ;;  %v1521_v29 = vld [vmem:[%s2863_s8 + $0x18] sm:$0xff] }
 0x4fe   : > { %2238 = vmatprep.mubr.msk.f32.mxu1 %vm2641_vm2, %v2640_v41 }
 0x5b5   : > { %v2955_v30 = vpop.f32.mrf.mxu0 }
 0x5b7   : > { %v2215_v31 = vpop.f32.mrf.mxu0 }
 0x5b8   : > { %v1519_v31 = vld [vmem:[%s2863_s8 + $0x8] sm:$0xff] }
 0x5b9   : > { %v2957_v32 = vpop.f32.mrf.mxu1  ;;  %v1118_v33 = vpop.f32.mrf.mxu0 }
 0x5ba   : > { %v1200_v34 = vmul.f32 0.25, %v1118_v33 }
 0x5bb   : > { %v2220_v35 = vpop.f32.mrf.mxu1  ;;  %v2225_v36 = vpop.f32.mrf.mxu0 }
 0x5bc   : > { %v1202_v38 = vadd.f32 %v1200_v34, %v2921_v59 }
 0x5bd   : > { %v1196_v39 = vpop.f32.mrf.mxu1 }
 0x5be   : > { %v1201_v42 = vmul.f32 0.25, %v1196_v39  ;;  %v1204_v43 = vsel %vm869_vm4, %v1202_v38, -inf }
 0x5bf   : > { %v2230_v44 = vpop.f32.mrf.mxu1  ;;  %1205 = vmax.xlane.f32.xlu1 %v1204_v43  ;;  %v2113_v43 = vld [vmem:[%s2834_s15 + $0x4] ss:$0 sm:$0xff] }
 0x5c0   : > { %v1203_v47 = vadd.f32 %v1201_v42, %v2924_v1  ;;  %v1391_v1 = vld [vmem:[%s2858_s20 + $0x18] sm:$0xff] }
 0x5c2   : > { %v1207_v41 = vsel %vm869_vm4, %v1203_v47, -inf }
 0x5c3   : > { %1208 = vmax.xlane.f32.xlu0 %v1207_v41 }
 0x5d9   : > { %1302 = vrot.lane.b32.xlu0 %v2906_v46, %s2647_s1 }
 0x648   : > { %v1206_v48 = vpop.xlane.xlu1 %1205 }
 0x649   : > { %v1210_v49 = vsub.f32 %v1202_v38, %v1206_v48 }
 0x64b   : > { %v1212_v50 = vmul.f32 1.442695, %v1210_v49 }
 0x64c   : > { %v1209_v51 = vpop.xlane.xlu0 %1208 }
 0x64d   : > { %2407 = vpow2.f32 %v1212_v50  ;;  %v1211_v52 = vsub.f32 %v1203_v47, %v1209_v51  ;;  %v2114_v47 = vld [vmem:[%s2834_s15 + $0x5] ss:$0 sm:$0xff] }
 0x64f   : > { %v1214_v53 = vmul.f32 1.442695, %v1211_v52 }
 0x650   : > { %v1303_v54 = vpop.permute.xlu0 %1302 }
 0x651   : > { %2409 = vpow2.f32 %v1214_v53  ;;  %2237 = vmatpush3.msra.mxu1 %v1303_v54  ;;  %v1632_v53 = vld [vmem:[%s2868_s24 + $0x38] sm:$0xff]  ;;  %v1631_v54 = vld [vmem:[%s2868_s24 + $0x30] sm:$0xff] }
 0x652   : > { %2252 = vmatprep.subr.mxu1 %v1521_v29 }
 0x65a   : > { %v2408_v55 = vpop.eup %2407 }
 0x65b   : > { %v1216_v56 = vsel %vm869_vm4, %v2408_v55, 0.0 }
 0x65c   : > { %1217 = vadd.xlane.f32.xlu1 %v1216_v56  ;;  %v1629_v56 = vld [vmem:[%s2868_s24 + $0x20] sm:$0xff] }
 0x65e   : > { %v2410_v57 = vpop.eup %2409 }
 0x65f   : > { %v1219_v58 = vsel %vm869_vm4, %v2410_v57, 0.0 }
 0x660   : > { %1220 = vadd.xlane.f32.xlu1 %v1219_v58  ;;  %v1627_v58 = vld [vmem:[%s2868_s24 + $0x10] sm:$0xff] }
 0x671   : > { %1226 = vrot.lane.b32.xlu1 %v2903_v45, %s2647_s1  ;;  %v1389_v45 = vld [vmem:[%s2858_s20 + $0x8] sm:$0xff] }
 0x6e5   : > { %v1218_v46 = vpop.xlane.xlu1 %1217 }
 0x6e6   : > { %2411 = vrcp.f32 %v1218_v46  ;;  %v1626_v46 = vld [vmem:[%s2868_s24 + $0x8] sm:$0xff] }
 0x6e9   : > { %v1221_v59 = vpop.xlane.xlu1 %1220 }
 0x6ea   : > { %2413 = vrcp.f32 %v1221_v59  ;;  %v1625_v59 = vld [vmem:[%s2868_s24] sm:$0xff] }
 0x6ed   : > { %v1227_v60 = vpop.permute.xlu1 %1226 }
 0x6ee   : > { %2232 = vmatpush3.msra.mxu0 %v1227_v60  ;;  %v2115_v60 = vld [vmem:[%s2834_s15 + $0x2] ss:$0 sm:$0xff] }
 0x6ef   : > { %2241 = vmatprep.subr.mxu0 %v1391_v1 }
 0x6f3   : > { %v2412_v61 = vpop.eup %2411 }
 0x6f4   : > { %v1224_v62 = vmul.f32 %v2412_v61, %v2408_v55  ;;  %v1630_v55 = vld [vmem:[%s2868_s24 + $0x28] sm:$0xff] }
 0x6f6   : > { %2234 = vmatmul.mubr.msk.f32.vlgmr.msra.gmra.mxu0 %vm869_vm4, %v1224_v62 }
 0x6f7   : > { %v2414_v63 = vpop.eup %2413  ;;  %2242 = vmatpush3.msra.mxu0 %v1391_v1 }
 0x6f8   : > { %v1225_v0 = vmul.f32 %v2414_v63, %v2410_v57  ;;  %2243 = vmatprep.subr.mxu0 %v1390_v2  ;;  %v1628_v57 = vld [vmem:[%s2868_s24 + $0x18] sm:$0xff] }
 0x6f9   : > { %2244 = vmatpush3.msra.mxu0 %v1390_v2 }
 0x6fa   : > { %2239 = vmatmul.mubr.msk.f32.vlgmr.msra.gmra.mxu1 %vm869_vm4, %v1225_v0  ;;  %2245 = vmatprep.subr.mxu0 %v1389_v45 }
 0x6fb   : > { %2246 = vmatpush3.msra.mxu0 %v1389_v45  ;;  %2253 = vmatpush3.msra.mxu1 %v1521_v29 }
 0x6fc   : > { %2247 = vmatprep.subr.mxu0 %v1388_v3 }
 0x6fd   : > { %2248 = vmatpush3.msra.mxu0 %v1388_v3 }
 0x6fe   : > { %2263 = vmatprep.subr.mxu0 %v1632_v53 }
 0x7b6   : > { %v1298_v4 = vpop.f32.mrf.mxu0 }
 0x7b7   : > { %1380 = vrot.lane.b32.xlu1 %v1298_v4, %s2648_s27 }
 0x7b8   : > { %v2235_v5 = vpop.f32.mrf.mxu0 }
 0x7ba   : > { %v1374_v6 = vpop.f32.mrf.mxu1 }
 0x7bb   : > { %1382 = vrot.lane.b32.xlu1 %v1374_v6, %s2648_s27 }
 0x7bc   : > { %v2240_v7 = vpop.f32.mrf.mxu1 }
 0x829   : > { %v1381_v8 = vpop.permute.xlu1 %1380 }
 0x82a   : > { %v1386_v9 = vsel %vm703_vm3, %v2955_v30, %v1381_v8  ;;  %v1520_v30 = vld [vmem:[%s2863_s8 + $0x10] sm:$0xff] }
 0x82b   : > { %2249 = vmatprep.mubr.msk.f32.mxu0 %vm594_vm1, %v1386_v9  ;;  %2254 = vmatprep.subr.mxu1 %v1520_v30 }
 0x82c   : > { %2255 = vmatpush3.msra.mxu1 %v1520_v30 }
 0x82d   : > { %v1383_v10 = vpop.permute.xlu1 %1382  ;;  %2256 = vmatprep.subr.mxu1 %v1519_v31 }
 0x82e   : > { %v1387_v11 = vsel %vm703_vm3, %v2957_v32, %v1383_v10  ;;  %2257 = vmatpush3.msra.mxu1 %v1519_v31  ;;  %v1518_v32 = vld [vmem:[%s2863_s8] sm:$0xff] }
 0x82f   : > { %2250 = vmatmul.mubr.msk.f32.vlgmr.msra.gmra.mxu0 %vm594_vm1, %v1387_v11  ;;  %2258 = vmatprep.subr.mxu1 %v1518_v32 }
 0x830   : > { %2259 = vmatpush3.msra.mxu1 %v1518_v32  ;;  %2264 = vmatpush3.msra.mxu0 %v1632_v53 }
 0x831   : > { %2265 = vmatprep.subr.mxu0 %v1631_v54 }
 0x832   : > { %2266 = vmatpush3.msra.mxu0 %v1631_v54 }
 0x833   : > { %2267 = vmatprep.subr.mxu0 %v1630_v55 }
 0x834   : > { %2268 = vmatpush3.msra.mxu0 %v1630_v55 }
 0x835   : > { %2269 = vmatprep.subr.mxu0 %v1629_v56 }
 0x836   : > { %2270 = vmatpush3.msra.mxu0 %v1629_v56 }
 0x837   : > { %2271 = vmatprep.subr.mxu0 %v1628_v57 }
 0x838   : > { %2272 = vmatpush3.msra.mxu0 %v1628_v57 }
 0x839   : > { %2273 = vmatprep.subr.mxu0 %v1627_v58 }
 0x83a   : > { %2274 = vmatpush3.msra.mxu0 %v1627_v58 }
 0x83b   : > { %2275 = vmatprep.subr.mxu0 %v1626_v46 }
 0x83c   : > { %2276 = vmatpush3.msra.mxu0 %v1626_v46 }
 0x83d   : > { %2277 = vmatprep.subr.mxu0 %v1625_v59 }
 0x83e   : > { %2278 = vmatpush3.msra.mxu0 %v1625_v59 }
 0x8ef   : > { %v2251_v13 = vpop.f32.mrf.mxu0 }
 0x8f0   : > { %v1474_v14 = vadd.f32 %v2251_v13, %v2110_v12 }
 0x8f1   : > { %v1468_v15 = vpop.f32.mrf.mxu0 }
 0x8f2   : > { %v1469_v16 = vadd.f32 %v2110_v12, %v1468_v15  ;;  %v1478_v17 = vadd.f32 %v1474_v14, %v2892_v40 }
 0x8f4   : > { %v1482_v18 = vsel %vm594_vm1, %v1478_v17, 0.0  ;;  %v1477_v19 = vadd.f32 %v1469_v16, %v2886_v37 }
 0x8f5   : > { %1483 = vadd.xlane.f32.xlu1 %v1482_v18  ;;  %v2118_v18 = vld [vmem:[%s2834_s15 + $0x3] ss:$0 sm:$0xff] }
 0x8f6   : > { %v1479_v20 = vsel %vm594_vm1, %v1477_v19, 0.0 }
 0x8f7   : > { %1480 = vadd.xlane.f32.xlu0 %v1479_v20 }
 0x97e   : > { %v1484_v21 = vpop.xlane.xlu1 %1483 }
 0x97f   : > { %v1487_v22 = vmul.f32 0.03125, %v1484_v21 }
 0x980   : > { %v1481_v23 = vpop.xlane.xlu0 %1480 }
 0x981   : > { %v1486_v24 = vmul.f32 0.03125, %v1481_v23  ;;  %v1489_v25 = vsub.f32 %v1478_v17, %v1487_v22 }
 0x983   : > { %v1488_v26 = vsub.f32 %v1477_v19, %v1486_v24  ;;  %v1491_v28 = vmul.f32 %v1489_v25, %v1489_v25 }
 0x985   : > { %v1490_v27 = vmul.f32 %v1488_v26, %v1488_v26  ;;  %v1495_v37 = vsel %vm594_vm1, %v1491_v28, 0.0 }
 0x987   : > { %v1492_v40 = vsel %vm594_vm1, %v1490_v27, 0.0 }
 0x988   : > { %1493 = vadd.xlane.f32.xlu0 %v1492_v40 }
 0x98c   : > { %1496 = vadd.xlane.f32.xlu0 %v1495_v37 }
 0xa11   : > { %v1494_v33 = vpop.xlane.xlu0 %1493 }
 0xa12   : > { %v1498_v34 = vmul.f32 0.03125, %v1494_v33 }
 0xa14   : > { %v1500_v35 = vadd.f32 1e-12, %v1498_v34 }
 0xa15   : > { %v1497_v36 = vpop.xlane.xlu0 %1496 }
 0xa16   : > { %2415 = vrsqrt.f32 %v1500_v35  ;;  %v1499_v38 = vmul.f32 0.03125, %v1497_v36 }
 0xa18   : > { %v1501_v39 = vadd.f32 1e-12, %v1499_v38 }
 0xa1a   : > { %2417 = vrsqrt.f32 %v1501_v39 }
 0xa23   : > { %v2416_v42 = vpop.eup %2415 }
 0xa24   : > { %v1504_v44 = vmul.f32 %v2416_v42, %v1488_v26 }
 0xa26   : > { %v1510_v41 = vmul.f32 %v2113_v43, %v1504_v44 }
 0xa27   : > { %v2418_v48 = vpop.eup %2417 }
 0xa28   : > { %v1505_v49 = vmul.f32 %v2418_v48, %v1489_v25  ;;  %v2992_v50 = vadd.f32 %v2114_v47, %v1510_v41 }
 0xa2a   : > { %v1511_v51 = vmul.f32 %v2113_v43, %v1505_v49  ;;  %2260 = vmatprep.mubr.msk.f32.mxu1 %vm594_vm1, %v2992_v50  ;;  %v2122_v49 = vld [vmem:[%s2834_s15 + $0x7] ss:$0 sm:$0xff] }
 0xa2c   : > { %v1517_v52 = vadd.f32 %v2114_v47, %v1511_v51  ;;  %v2121_v47 = vld [vmem:[%s2834_s15 + $0x6] ss:$0 sm:$0xff] }
 0xa2e   : > { %2261 = vmatmul.mubr.msk.f32.vlgmr.msra.gmra.mxu1 %vm594_vm1, %v1517_v52 }
 0xaee   : > { %v2262_v61 = vpop.f32.mrf.mxu1 }
 0xaef   : > { %v1604_v62 = vadd.f32 %v2262_v61, %v2115_v60 }
 0xaf0   : > { %v1598_v63 = vpop.f32.mrf.mxu1 }
 0xaf1   : > { %v1608_v0 = vmul.f32 %v1604_v62, %v1604_v62  ;;  %v1599_v1 = vadd.f32 %v2115_v60, %v1598_v63 }
 0xaf3   : > { %v1610_v2 = vmul.f32 %v1608_v0, %v1604_v62  ;;  %v1607_v45 = vmul.f32 %v1599_v1, %v1599_v1 }
 0xaf5   : > { %v1612_v3 = vmul.f32 0.044715, %v1610_v2  ;;  %v1609_v4 = vmul.f32 %v1607_v45, %v1599_v1 }
 0xaf7   : > { %v1614_v5 = vadd.f32 %v1612_v3, %v1604_v62  ;;  %v1611_v6 = vmul.f32 0.044715, %v1609_v4 }
 0xaf9   : > { %v1616_v7 = vmul.f32 0.7978846, %v1614_v5  ;;  %v1613_v8 = vadd.f32 %v1611_v6, %v1599_v1 }
 0xafb   : > { %2419 = vtanh.f32 %v1616_v7  ;;  %v1615_v9 = vmul.f32 0.7978846, %v1613_v8 }
 0xafd   : > { %2421 = vtanh.f32 %v1615_v9 }
 0xb08   : > { %v2420_v10 = vpop.eup %2419 }
 0xb09   : > { %v1620_v11 = vadd.f32 1.0, %v2420_v10 }
 0xb0a   : > { %v2422_v12 = vpop.eup %2421 }
 0xb0b   : > { %v1619_v13 = vadd.f32 1.0, %v2422_v12  ;;  %v1622_v14 = vmul.f32 0.5, %v1620_v11 }
 0xb0d   : > { %v1621_v15 = vmul.f32 0.5, %v1619_v13  ;;  %v1624_v17 = vmul.f32 %v1622_v14, %v1604_v62 }
 0xb0f   : > { %v1623_v16 = vmul.f32 %v1621_v15, %v1599_v1 }
 0xb11   : > { %2279 = vmatprep.mubr.msk.f32.mxu0 %vm1637_vm5, %v1623_v16 }
 0xb12   : > { %2280 = vmatmul.mubr.msk.f32.vlgmr.msra.gmra.mxu0 %vm1637_vm5, %v1624_v17 }
 0xbd2   : > { %v2281_v19 = vpop.f32.mrf.mxu0 }
 0xbd3   : > { %v1716_v20 = vadd.f32 %v2281_v19, %v2118_v18 }
 0xbd4   : > { %v1710_v21 = vpop.f32.mrf.mxu0 }
 0xbd5   : > { %v1711_v22 = vadd.f32 %v2118_v18, %v1710_v21  ;;  %v1720_v23 = vadd.f32 %v1716_v20, %v1517_v52 }
 0xbd7   : > { %v1724_v24 = vsel %vm594_vm1, %v1720_v23, 0.0  ;;  %v1719_v25 = vadd.f32 %v1711_v22, %v2992_v50 }
 0xbd8   : > { %1725 = vadd.xlane.f32.xlu0 %v1724_v24 }
 0xbd9   : > { %v1721_v26 = vsel %vm594_vm1, %v1719_v25, 0.0 }
 0xbda   : > { %1722 = vadd.xlane.f32.xlu1 %v1721_v26 }
 0xc61   : > { %v1726_v27 = vpop.xlane.xlu0 %1725 }
 0xc62   : > { %v1728_v40 = vmul.f32 0.03125, %v1726_v27 }
 0xc63   : > { %v1723_v28 = vpop.xlane.xlu1 %1722 }
 0xc64   : > { %v1730_v37 = vsub.f32 %v1720_v23, %v1728_v40  ;;  %v1727_v29 = vmul.f32 0.03125, %v1723_v28 }
 0xc66   : > { %v1729_v30 = vsub.f32 %v1719_v25, %v1727_v29  ;;  %v1732_v31 = vmul.f32 %v1730_v37, %v1730_v37 }
 0xc68   : > { %v1736_v32 = vsel %vm594_vm1, %v1732_v31, 0.0  ;;  %v1731_v33 = vmul.f32 %v1729_v30, %v1729_v30 }
 0xc69   : > { %1737 = vadd.xlane.f32.xlu0 %v1736_v32 }
 0xc6a   : > { %v1733_v34 = vsel %vm594_vm1, %v1731_v33, 0.0 }
 0xc6b   : > { %1734 = vadd.xlane.f32.xlu1 %v1733_v34 }
 0xcf2   : > { %v1738_v35 = vpop.xlane.xlu0 %1737 }
 0xcf3   : > { %v1740_v36 = vmul.f32 0.03125, %v1738_v35 }
 0xcf4   : > { %v1735_v38 = vpop.xlane.xlu1 %1734 }
 0xcf5   : > { %v1742_v39 = vadd.f32 1e-12, %v1740_v36  ;;  %v1739_v42 = vmul.f32 0.03125, %v1735_v38 }
 0xcf7   : > { %2423 = vrsqrt.f32 %v1742_v39  ;;  %v1741_v43 = vadd.f32 1e-12, %v1739_v42 }
 0xcf9   : > { %2425 = vrsqrt.f32 %v1741_v43 }
 0xd04   : > { %v2424_v44 = vpop.eup %2423 }
 0xd05   : > { %v1746_v41 = vmul.f32 %v2424_v44, %v1730_v37 }
 0xd06   : > { %v2426_v48 = vpop.eup %2425 }
 0xd07   : > { %v1752_v50 = vmul.f32 %v2121_v47, %v1746_v41  ;;  %v1745_v51 = vmul.f32 %v2426_v48, %v1729_v30 }
 0xd09   : > { %v1758_v52 = vadd.f32 %v2122_v49, %v1752_v50  ;;  %v1751_v53 = vmul.f32 %v2121_v47, %v1745_v51  ;;  %1764 = sbr.rel (%p2123_p7) target bundleno = 3756 (0xeac), region = 93 }
 0xd0b   : > { %1760 = vst.msk [vmem:[#allocation2 + $0x8] sm:$0xff] %vm594_vm1, %v1758_v52  ;;  %v1757_v54 = vadd.f32 %v2122_v49, %v1751_v53 }
 0xd0d   : > { %1759 = vst.msk [vmem:[#allocation2] sm:$0xff] %vm594_vm1, %v1757_v54 }
 0xd0e   : > { %v1769_v55 = vld [vmem:[#allocation8 + $0x18] sm:$0xff]  ;;  %v2649_v56 = vmov 0.0   ;;  %v1768_v57 = vld [vmem:[#allocation8 + $0x10] sm:$0xff]  ;;  %vm2650_vm6 = vmmov 0   ;;  %v1767_v58 = vld [vmem:[#allocation8 + $0x8] sm:$0xff] }
 0xd0f   : > { %2282 = vmatprep.subr.mxu0 %v2649_v56  ;;  %2290 = vmatprep.mubr.msk.f32.mxu0 %vm2650_vm6, %v2649_v56  ;;  %v1766_v46 = vld [vmem:[#allocation8] sm:$0xff]  ;;  %v1854_v60 = vld [vmem:[#allocation9 + $0x18] sm:$0xff]  ;;  %v1853_v61 = vld [vmem:[#allocation9 + $0x10] sm:$0xff] }
 0xd10   : > { %2283 = vmatpush3.msra.mxu0 %v1769_v55  ;;  %2293 = vmatprep.subr.mxu1 %v2649_v56  ;;  %v1852_v62 = vld [vmem:[#allocation9 + $0x8] sm:$0xff]  ;;  %v1851_v63 = vld [vmem:[#allocation9] sm:$0xff]  ;;  %v2124_v0 = vld [vmem:[%s3059_s9] ss:$0 sm:$0xff] }
 0xd11   : > { %2284 = vmatprep.subr.mxu0 %v2649_v56  ;;  %2301 = vmatprep.mubr.msk.f32.mxu1 %vm2650_vm6, %v2649_v56  ;;  %v2126_v4 = vld [vmem:[%s3061_s11] ss:$0 sm:$0xff] }
 0xd12   : > { %2285 = vmatpush3.msra.mxu0 %v1768_v57  ;;  %2294 = vmatpush3.msra.mxu1 %v1854_v60 }
 0xd13   : > { %2286 = vmatprep.subr.mxu0 %v2649_v56  ;;  %2295 = vmatprep.subr.mxu1 %v2649_v56 }
 0xd14   : > { %2287 = vmatpush3.msra.mxu0 %v1767_v58  ;;  %v1765_v59 = vld [vmem:[#allocation2] ss:$8 sm:$0x3]  ;;  %2296 = vmatpush3.msra.mxu1 %v1853_v61 }
 0xd15   : > { %2288 = vmatprep.subr.mxu0 %v2649_v56  ;;  %2297 = vmatprep.subr.mxu1 %v2649_v56 }
 0xd16   : > { %2289 = vmatpush3.msra.mxu0 %v1766_v46  ;;  %2298 = vmatpush3.msra.mxu1 %v1852_v62 }
 0xd17   : > { %2291 = vmatmul.mubr.msk.f32.vlgmr.msra.gmra.mxu0 %vm594_vm1, %v1765_v59  ;;  %2299 = vmatprep.subr.mxu1 %v2649_v56 }
 0xd18   : > { %2300 = vmatpush3.msra.mxu1 %v1851_v63 }
 0xdd7   : > { %v1846_v1 = vpop.f32.mrf.mxu0 }
 0xdd8   : > { %v1847_v2 = vadd.f32 %v2124_v0, %v1846_v1 }
 0xdd9   : > { %v2292_v45 = vpop.f32.mrf.mxu0 }
 0xdda   : > { %2427 = vtanh.f32 %v1847_v2 }
 0xde7   : > { %v2428_v3 = vpop.eup %2427 }
 0xde8   : > { %2302 = vmatmul.mubr.msk.f32.vlgmr.msra.gmra.mxu1 %vm594_vm1, %v2428_v3 }
 0xea8   : > { %v1931_v5 = vpop.f32.mrf.mxu1 }
 0xea9   : > { %v1932_v6 = vadd.f32 %v2126_v4, %v1931_v5 }
 0xeaa   : > { %v2303_v7 = vpop.f32.mrf.mxu1 }
 0xeab   : > { %1935 = vst [vmem:[#allocation11] sm:$0x3] %v1932_v6 }
 0xeac PF: > { %p2343_p0 = scmp.eq.s32.totalorder %s2736_s25, 1  ;;  %s2651_s26 = smov [#allocation11]  }
 0xead   : > { %s1943_s21 = sshll.u32 %s2651_s26, 4  ;;  %s1944_s21 = int_to_ptr.vmem [resolvable:$true] %s1943_s21 }
 0xeae   : > { %s2555_s16 = scalar_lea.vmem %s1944_s21, 32  ;;  %p2562_p1 = scmp.lt.s32.totalorder %s1944_s21, %s1944_s21 }
 0xeaf   : > { %p2556_p6 = scmp.ne.s32.totalorder %s1944_s21, %s2555_s16  ;;  %p2563_p4 = scmp.lt.s32.totalorder %s2555_s16, %s2555_s16 }
 0xeb1   : > { %p2557_p8 = pnand %p2556_p6, %p2343_p0  ;;  %p2564_p5 = por %p2563_p4, %p2562_p1 }
 0xeb3   : > { %p2558_p10 = pneg %p2557_p8 }
 0xeb5   : > { %p2565_p9 = pnand %p2564_p5, %p2558_p10 }
 0xeb7   : > { %2568 = shalt.err (!%p2565_p9)
}
 0xeb8   : > { %2319 = dma.vmem_to_hbm [thread:$0]  (%p2343_p0), %s1944_s21, 32, %s3062_s12, [#allocation5]  }
 0xeb9   : > { %2614 = dma.done.wait (%p2343_p0), [#allocation5], 32  }
 0xeba   : > { %2616 = vsyncadd (%p2343_p0), [#allocation5], 4294967264 }
 0xebb PF: > { %p25_p11 = scmp.ge.s32.totalorder %s2788_s14, 4   ;;  %s3085_s21 = smov %s2623_s22 }
 0xebc   : > { %s3086_s22 = smov %s2627_s23  ;;  %s3087_s23 = smov %s2798_s28 }
 0xebd   : > { %s3088_s24 = smov %s2788_s14  ;;  %27 = sbr.rel (!%p25_p11) target bundleno = 10 (0xa), region = 139 }
 0xec2   :  { %1956 = vsyncpa [#allocation4], 1 }
 0xec3   :  { %1958 = vsyncpa [#allocation4 + $0x1], 1 }
 0xec4   :  { %1959 = vsyncpa [#allocation7], 1 }
 0xec5   :  { %1961 = vsyncpa [#allocation7 + $0x1], 1 }
 0xec6   :  { %1962 = vsyncpa [#allocation10], 1 }
 0xec7   :  { %1963 = vsyncpa [#allocation5], 1 }
 0xec8   :  { %1965 = vsyncpa [#allocation5 + $0x1], 1 }

</bundles_post_ra>
